<compile_context>
chip_gen: v7x
topology: tpu7x:2x2x1
jax: 0.10.0
libtpu: 0.0.40
codegen_flags: <defaults>
</compile_context>

<pallas_src>
import math

import numpy as np
import jax
import jax.numpy as jnp
from jax import lax
from jax.experimental import pallas as pl
from jax.experimental.pallas import tpu as pltpu

_EPS = 1e-5  # torch GroupNorm default


# ----------------------------------------------------------------------------
# Elementwise helpers (VPU-only ops, safe to lower in Mosaic).
# ----------------------------------------------------------------------------
def _erf_approx(x):
    # Abramowitz & Stegun 7.1.26, |abs err| <= 1.5e-7 (odd-symmetric).
    p = 0.3275911
    a1, a2, a3, a4, a5 = (0.254829592, -0.284496736, 1.421413741,
                          -1.453152027, 1.061405429)
    s = jnp.where(x < 0.0, -1.0, 1.0)
    z = jnp.abs(x)
    t = 1.0 / (1.0 + p * z)
    poly = ((((a5 * t + a4) * t + a3) * t + a2) * t + a1) * t
    return s * (1.0 - poly * jnp.exp(-z * z))


def _gelu_exact(x):
    # PyTorch nn.GELU() default (exact, erf-based), to ~1e-7 absolute.
    return 0.5 * x * (1.0 + _erf_approx(x * (1.0 / math.sqrt(2.0))))


# ----------------------------------------------------------------------------
# Kernel 1: GroupNorm(1, C) + 3x3 conv1  ->  mid  (one sample per grid step)
# ----------------------------------------------------------------------------
def _make_front_kernel(H, W, C):
    HW = H * W

    def kernel(x_ref, w1_ref, b1_ref, g1_ref, be1_ref, mid_ref, xpad_ref):
        # x_ref:   (1, HW, C)  one sample, channels on lanes
        # w1_ref:  (9, C, C)   conv1 taps as (k, Cin, Cout)  (hoisted in wrapper)
        # mid_ref: (1, HW, C)
        # xpad_ref: VMEM scratch (H+2, W+2, C) f32 -- zero-padded normalized input
        x = x_ref[0].astype(jnp.float32)                      # (HW, C)

        # GroupNorm(1, C): full-sample stats computed in-VMEM (no extra HBM pass).
        n = float(HW * C)
        mean = jnp.sum(x) * (1.0 / n)
        xc = x - mean
        var = jnp.sum(xc * xc) * (1.0 / n)
        rstd = lax.rsqrt(var + _EPS)
        xn = xc * rstd * g1_ref[...] + be1_ref[...]           # (HW, C)

        # Zero-pad border every step (safe under "parallel" megacore splitting),
        # then write the normalized interior.
        zrow = jnp.zeros((1, W + 2, C), jnp.float32)
        zcol = jnp.zeros((H + 2, 1, C), jnp.float32)
        xpad_ref[0:1, :, :] = zrow
        xpad_ref[H + 1:H + 2, :, :] = zrow
        xpad_ref[:, 0:1, :] = zcol
        xpad_ref[:, W + 1:W + 2, :] = zcol
        xpad_ref[1:H + 1, 1:W + 1, :] = xn.reshape(H, W, C)

        # 3x3 conv as nine shifted (HW, C) @ (C, C) MXU matmuls (f32 accumulate).
        acc = jnp.zeros((HW, C), jnp.float32)
        for k in range(9):
            dy, dx = k // 3, k % 3
            win = xpad_ref[dy:dy + H, dx:dx + W, :].reshape(HW, C)
            acc = acc + jnp.dot(win, w1_ref[k], preferred_element_type=jnp.float32)
        mid_ref[0] = (acc + b1_ref[...]).astype(mid_ref.dtype)

    return kernel


# ----------------------------------------------------------------------------
# Kernel 2: HOAF + GELU + 3x3 conv2 + residual   (one sample per grid step)
# ----------------------------------------------------------------------------
def _make_back_kernel(H, W, C, P, res_scale):
    HW = H * W
    Ch = C // 2

    def kernel(mid_ref, x_ref, sa_ref, sb_ref, wg_ref, be_ref, bt2_ref,
               w2_ref, b2_ref, out_ref, gpad_ref):
        mid = mid_ref[0].astype(jnp.float32)                  # (HW, C)
        m0 = mid[:, :Ch]                                      # HOAF input
        m1 = mid[:, Ch:]

        # HOAF pairwise channel products, already in the channel_shuffle'd order
        # (channel bookkeeping folded into 0/1 selector matrices in the wrapper).
        pa = jnp.dot(m0, sa_ref[...], preferred_element_type=jnp.float32)  # (HW, P)
        pb = jnp.dot(m0, sb_ref[...], preferred_element_type=jnp.float32)
        prod = pa * pb

        # GroupNorm(1, P) stats over the whole sample (resident in VMEM).
        n2 = float(HW * P)
        mean2 = jnp.sum(prod) * (1.0 / n2)
        pc = prod - mean2
        var2 = jnp.sum(pc * pc) * (1.0 / n2)
        rstd2 = lax.rsqrt(var2 + _EPS)

        # norm2 affine + grouped 1x1 conv folded into one dense matmul (hoisted).
        core = jnp.dot(pc, wg_ref[...], preferred_element_type=jnp.float32) * rstd2 \
               + be_ref[...]                                   # (HW, Ch)
        hoaf = m0 + bt2_ref[...] * core

        # cat([hoaf, mid1], channel) -> exact GELU.
        g = _gelu_exact(jnp.concatenate([hoaf, m1], axis=-1))  # (HW, C)

        # Zero-padded scratch + nine shifted matmuls for 3x3 conv2.
        zrow = jnp.zeros((1, W + 2, C), jnp.float32)
        zcol = jnp.zeros((H + 2, 1, C), jnp.float32)
        gpad_ref[0:1, :, :] = zrow
        gpad_ref[H + 1:H + 2, :, :] = zrow
        gpad_ref[:, 0:1, :] = zcol
        gpad_ref[:, W + 1:W + 2, :] = zcol
        gpad_ref[1:H + 1, 1:W + 1, :] = g.reshape(H, W, C)

        acc = jnp.zeros((HW, C), jnp.float32)
        for k in range(9):
            dy, dx = k // 3, k % 3
            win = gpad_ref[dy:dy + H, dx:dx + W, :].reshape(HW, C)
            acc = acc + jnp.dot(win, w2_ref[k], preferred_element_type=jnp.float32)
        conv_out = acc + b2_ref[...]

        out_ref[0] = (x_ref[0].astype(jnp.float32)
                      + res_scale * conv_out).astype(out_ref.dtype)

    return kernel


# ----------------------------------------------------------------------------
# Wrapper
# ----------------------------------------------------------------------------
def _channel_shuffle_perm(num_channels, groups):
    # perm such that  shuffled[:, s] = x[:, perm[s]]  (mirrors torch channel_shuffle)
    idx = np.arange(num_channels).reshape(groups, num_channels // groups)
    return idx.T.reshape(-1)


def residual_block_hoaf_forward(x_nchw, params, res_scale=1.0):
    """Forward of ResidualBlockNoBN_HOAF.  x_nchw: (N, C, H, W).  Returns NCHW."""
    N, C, H, W = x_nchw.shape
    assert C % 8 == 0, "num_feat must be divisible by 8"
    HW = H * W
    Ch = C // 2            # HOAF num_channels
    G = Ch // 4            # HOAF num_groups (ch_per_gp is always 4)
    P = 10 * G             # pairwise-product channels (= out_channels2 * num_groups)
    f32 = jnp.float32

    # ---- hoisted weight preparation (no per-grid-step transpose/cast) ----
    w1 = jnp.transpose(params["conv1_weight"].astype(f32), (2, 3, 1, 0)).reshape(9, C, C)
    b1 = params["conv1_bias"].astype(f32).reshape(1, C)
    w2 = jnp.transpose(params["conv2_weight"].astype(f32), (2, 3, 1, 0)).reshape(9, C, C)
    b2 = params["conv2_bias"].astype(f32).reshape(1, C)
    g1 = params["norm1_weight"].astype(f32).reshape(1, C)
    be1 = params["norm1_bias"].astype(f32).reshape(1, C)

    # HOAF static channel bookkeeping: channel_shuffle / chunk / cat / shuffle are
    # pure channel permutations -> fold into two 0/1 selector matrices so the
    # kernel only runs dense MXU matmuls (no lane gathers).
    perm1 = _channel_shuffle_perm(Ch, 4)            # shuffled[s]  = m0[perm1[s]]
    sigma = perm1.reshape(4, G)                     # chunk k, pos g -> m0 channel
    pairs = [(i, j) for i in range(4) for j in range(i, 4)]        # 10 pairs
    cat_a = np.array([sigma[i, g] for (i, j) in pairs for g in range(G)])
    cat_b = np.array([sigma[j, g] for (i, j) in pairs for g in range(G)])
    perm2 = _channel_shuffle_perm(P, G)             # shuffled2[s] = cat[perm2[s]]
    shuf_a, shuf_b = cat_a[perm2], cat_b[perm2]
    sel_a = np.zeros((Ch, P), np.float32); sel_a[shuf_a, np.arange(P)] = 1.0
    sel_b = np.zeros((Ch, P), np.float32); sel_b[shuf_b, np.arange(P)] = 1.0
    sel_a, sel_b = jnp.asarray(sel_a), jnp.asarray(sel_b)

    # Fold norm2 affine + grouped 1x1 conv (groups=G, 10 -> 4 per group) into one
    # dense (P, Ch) matmul + effective bias.
    gamma2 = params["hoaf_norm2_weight"].astype(f32)            # (P,)
    beta2n = params["hoaf_norm2_bias"].astype(f32)              # (P,)
    wq = params["hoaf_conv2_weight"].astype(f32).reshape(G, 4, 10)
    wd0 = jnp.einsum("gou,gh->guho", wq, jnp.eye(G, dtype=f32)).reshape(P, Ch)
    wg = wd0 * gamma2[:, None]
    bias_eff = (params["hoaf_conv2_bias"].astype(f32) + wd0.T @ beta2n).reshape(1, Ch)
    beta2 = params["hoaf_beta2"].astype(f32).reshape(1, Ch)

    # ---- channels-last, flattened spatial (single fused transpose each way) ----
    x = jnp.transpose(x_nchw, (0, 2, 3, 1)).reshape(N, HW, C)

    cparams = pltpu.CompilerParams(
        dimension_semantics=("parallel",),          # batch split across v7x cores
        vmem_limit_bytes=64 * 1024 * 1024,          # raise scoped VMEM (feedback)
    )

    sample_spec = pl.BlockSpec((1, HW, C), lambda n: (n, 0, 0))

    mid = pl.pallas_call(
        _make_front_kernel(H, W, C),
        out_shape=jax.ShapeDtypeStruct((N, HW, C), x.dtype),
        grid_spec=pltpu.PrefetchScalarGridSpec(
            num_scalar_prefetch=0,
            grid=(N,),
            in_specs=[
                sample_spec,
                pl.BlockSpec((9, C, C), lambda n: (0, 0, 0)),
                pl.BlockSpec((1, C), lambda n: (0, 0)),
                pl.BlockSpec((1, C), lambda n: (0, 0)),
                pl.BlockSpec((1, C), lambda n: (0, 0)),
            ],
            out_specs=sample_spec,
            scratch_shapes=[pltpu.VMEM((H + 2, W + 2, C), jnp.float32)],
        ),
        compiler_params=cparams,
    )(x, w1, b1, g1, be1)

    out = pl.pallas_call(
        _make_back_kernel(H, W, C, P, float(res_scale)),
        out_shape=jax.ShapeDtypeStruct((N, HW, C), x.dtype),
        grid_spec=pltpu.PrefetchScalarGridSpec(
            num_scalar_prefetch=0,
            grid=(N,),
            in_specs=[
                sample_spec,                                    # mid
                sample_spec,                                    # x (identity)
                pl.BlockSpec((Ch, P), lambda n: (0, 0)),        # sel_a
                pl.BlockSpec((Ch, P), lambda n: (0, 0)),        # sel_b
                pl.BlockSpec((P, Ch), lambda n: (0, 0)),        # wg
                pl.BlockSpec((1, Ch), lambda n: (0, 0)),        # bias_eff
                pl.BlockSpec((1, Ch), lambda n: (0, 0)),        # beta2
                pl.BlockSpec((9, C, C), lambda n: (0, 0, 0)),   # w2
                pl.BlockSpec((1, C), lambda n: (0, 0)),         # b2
            ],
            out_specs=sample_spec,
            scratch_shapes=[pltpu.VMEM((H + 2, W + 2, C), jnp.float32)],
        ),
        compiler_params=cparams,
    )(mid, x, sel_a, sel_b, wg, bias_eff, beta2, w2, b2)

    return jnp.transpose(out.reshape(N, H, W, C), (0, 3, 1, 2))


# ----------------------------------------------------------------------------
# Pure-JAX reference (NCHW, mirrors the PyTorch module op-for-op).
# ----------------------------------------------------------------------------
def _reference(x, p, res_scale):
    N, C, H, W = x.shape
    Ch, G = C // 2, C // 8
    eps = _EPS

    def gn1(t, gamma, beta):
        m = jnp.mean(t, axis=(1, 2, 3), keepdims=True)
        v = jnp.mean((t - m) ** 2, axis=(1, 2, 3), keepdims=True)
        tn = (t - m) / jnp.sqrt(v + eps)
        return tn * gamma.reshape(1, -1, 1, 1) + beta.reshape(1, -1, 1, 1)

    def conv3x3(t, w, b):
        y = lax.conv_general_dilated(t, w, (1, 1), "SAME",
                                     dimension_numbers=("NCHW", "OIHW", "NCHW"))
        return y + b.reshape(1, -1, 1, 1)

    def chshuf(t, groups):
        b, c, h, w = t.shape
        return t.reshape(b, groups, c // groups, h, w).transpose(0, 2, 1, 3, 4).reshape(b, c, h, w)

    mid = conv3x3(gn1(x, p["norm1_weight"], p["norm1_bias"]),
                  p["conv1_weight"], p["conv1_bias"])
    m0, m1 = mid[:, :Ch], mid[:, Ch:]

    sh = chshuf(m0, 4)
    chunks = [sh[:, k * G:(k + 1) * G] for k in range(4)]
    prods = [chunks[i] * chunks[j] for i in range(4) for j in range(i, 4)]
    sh2 = chshuf(jnp.concatenate(prods, axis=1), G)
    n2 = gn1(sh2, p["hoaf_norm2_weight"], p["hoaf_norm2_bias"])
    cg = lax.conv_general_dilated(n2, p["hoaf_conv2_weight"], (1, 1), "VALID",
                                  dimension_numbers=("NCHW", "OIHW", "NCHW"),
                                  feature_group_count=G)
    cg = cg + p["hoaf_conv2_bias"].reshape(1, -1, 1, 1)
    hoaf = m0 + cg * p["hoaf_beta2"]

    g = jnp.concatenate([hoaf, m1], axis=1)
    g = 0.5 * g * (1.0 + lax.erf(g / jnp.sqrt(2.0)))           # exact GELU
    out = conv3x3(g, p["conv2_weight"], p["conv2_bias"])
    return x + out * res_scale


if __name__ == "__main__":
    key = jax.random.PRNGKey(0)
    keys = jax.random.split(key, 12)

    # num_feat=16 -> HOAF(num_groups=2, num_channels=8, num_pow=[1,2])
    N, C, H, W = 2, 16, 16, 16
    Ch, G = C // 2, C // 8
    P = 10 * G

    x = jax.random.normal(keys[0], (N, C, H, W), dtype=jnp.float32)

    def rnd(k, shape, scale):
        return scale * jax.random.normal(k, shape, dtype=jnp.float32)

    params = {
        "norm1_weight": 1.0 + 0.1 * jax.random.normal(keys[1], (C,), jnp.float32),
        "norm1_bias": rnd(keys[2], (C,), 0.1),
        "conv1_weight": rnd(keys[3], (C, C, 3, 3), 0.1 / math.sqrt(9 * C)),
        "conv1_bias": rnd(keys[4], (C,), 0.1),
        "conv2_weight": rnd(keys[5], (C, C, 3, 3), 1.0 / math.sqrt(9 * C)),
        "conv2_bias": rnd(keys[6], (C,), 0.1),
        "hoaf_norm2_weight": 1.0 + 0.1 * jax.random.normal(keys[7], (P,), jnp.float32),
        "hoaf_norm2_bias": rnd(keys[8], (P,), 0.1),
        "hoaf_conv2_weight": rnd(keys[9], (Ch, 10, 1, 1), 1.0 / math.sqrt(10)),
        "hoaf_conv2_bias": rnd(keys[10], (Ch,), 0.1),
        "hoaf_beta2": jnp.ones((1, Ch, 1, 1), jnp.float32),
    }

    y = residual_block_hoaf_forward(x, params, res_scale=1.0)
    jax.block_until_ready(y)

    y_ref = _reference(x, params, 1.0)
    max_err = float(jnp.max(jnp.abs(y - y_ref)))
    assert jnp.allclose(y, y_ref, atol=1e-4, rtol=1e-4), f"mismatch vs reference: {max_err}"

    print("KERNEL_OK")
</pallas_src>

<mosaic_0001>
module attributes {stable_mosaic.version = 11 : i64} {
  func.func @kernel(%arg0: i32, %arg1: memref<1x256x16xf32, #tpu.memory_space<vmem>>, %arg2: memref<9x16x16xf32, #tpu.memory_space<vmem>>, %arg3: memref<1x16xf32, #tpu.memory_space<vmem>>, %arg4: memref<1x16xf32, #tpu.memory_space<vmem>>, %arg5: memref<1x16xf32, #tpu.memory_space<vmem>>, %arg6: memref<1x256x16xf32, #tpu.memory_space<vmem>>, %arg7: memref<18x18x16xf32, #tpu.memory_space<vmem>>) attributes {dimension_semantics = [#tpu.dimension_semantics<parallel>], iteration_bounds = array<i64: 2>, scalar_prefetch = 0 : i64, scratch_operands = 1 : i64, tpu.core_type = #tpu.core_type<tc>, window_params = [{transform_indices = @transform_0, window_bounds = array<i64: 1, 256, 16>}, {pipeline_mode = #tpu.pipeline_mode<synchronous>, transform_indices = @transform_1, window_bounds = array<i64: 9, 16, 16>}, {pipeline_mode = #tpu.pipeline_mode<synchronous>, transform_indices = @transform_2, window_bounds = array<i64: 1, 16>}, {pipeline_mode = #tpu.pipeline_mode<synchronous>, transform_indices = @transform_3, window_bounds = array<i64: 1, 16>}, {pipeline_mode = #tpu.pipeline_mode<synchronous>, transform_indices = @transform_4, window_bounds = array<i64: 1, 16>}, {transform_indices = @transform_5, window_bounds = array<i64: 1, 256, 16>}]} {
    %c0 = arith.constant 0 : index
    %c0_0 = arith.constant 0 : index
    %c0_1 = arith.constant 0 : index
    %0 = vector.load %arg1[%c0, %c0_0, %c0_1] : memref<1x256x16xf32, #tpu.memory_space<vmem>>, vector<1x256x16xf32>
    %1 = vector.shape_cast %0 : vector<1x256x16xf32> to vector<256x16xf32>
    %2 = vector.shape_cast %1 : vector<256x16xf32> to vector<1x256x16xf32>
    %cst = arith.constant dense<0.000000e+00> : vector<1xf32>
    %3 = vector.multi_reduction <add>, %2, %cst [1, 2] : vector<1x256x16xf32> to vector<1xf32>
    %4 = vector.shape_cast %3 : vector<1xf32> to vector<1x1x1xf32>
    %5 = vector.extract %4[0, 0, 0] : f32 from vector<1x1x1xf32>
    %cst_2 = arith.constant 2.44140625E-4 : f32
    %6 = arith.mulf %5, %cst_2 : f32
    %7 = vector.broadcast %6 : f32 to vector<256x16xf32>
    %8 = arith.subf %1, %7 : vector<256x16xf32>
    %9 = arith.mulf %8, %8 : vector<256x16xf32>
    %10 = vector.shape_cast %9 : vector<256x16xf32> to vector<1x256x16xf32>
    %cst_3 = arith.constant dense<0.000000e+00> : vector<1xf32>
    %11 = vector.multi_reduction <add>, %10, %cst_3 [1, 2] : vector<1x256x16xf32> to vector<1xf32>
    %12 = vector.shape_cast %11 : vector<1xf32> to vector<1x1x1xf32>
    %13 = vector.extract %12[0, 0, 0] : f32 from vector<1x1x1xf32>
    %cst_4 = arith.constant 2.44140625E-4 : f32
    %14 = arith.mulf %13, %cst_4 : f32
    %cst_5 = arith.constant 9.99999974E-6 : f32
    %15 = arith.addf %14, %cst_5 : f32
    %16 = math.rsqrt %15 : f32
    %17 = vector.broadcast %16 : f32 to vector<256x16xf32>
    %18 = arith.mulf %8, %17 : vector<256x16xf32>
    %c0_6 = arith.constant 0 : index
    %c0_7 = arith.constant 0 : index
    %19 = vector.load %arg4[%c0_6, %c0_7] : memref<1x16xf32, #tpu.memory_space<vmem>>, vector<1x16xf32>
    %20 = vector.broadcast %19 : vector<1x16xf32> to vector<256x16xf32>
    %21 = arith.mulf %18, %20 : vector<256x16xf32>
    %c0_8 = arith.constant 0 : index
    %c0_9 = arith.constant 0 : index
    %22 = vector.load %arg5[%c0_8, %c0_9] : memref<1x16xf32, #tpu.memory_space<vmem>>, vector<1x16xf32>
    %23 = vector.broadcast %22 : vector<1x16xf32> to vector<256x16xf32>
    %24 = arith.addf %21, %23 : vector<256x16xf32>
    %cst_10 = arith.constant 0.000000e+00 : f32
    %25 = vector.broadcast %cst_10 : f32 to vector<1x18x16xf32>
    %cst_11 = arith.constant 0.000000e+00 : f32
    %26 = vector.broadcast %cst_11 : f32 to vector<18x1x16xf32>
    %c0_12 = arith.constant 0 : index
    %c0_13 = arith.constant 0 : index
    %c0_14 = arith.constant 0 : index
    %27 = vector.load %arg7[%c0_12, %c0_13, %c0_14] : memref<18x18x16xf32, #tpu.memory_space<vmem>>, vector<1x18x16xf32>
    tpu.vector_store %arg7[%c0_12, %c0_13, %c0_14], %25 {strides = array<i32>} : memref<18x18x16xf32, #tpu.memory_space<vmem>>, vector<1x18x16xf32>,
    %c17 = arith.constant 17 : index
    %c0_15 = arith.constant 0 : index
    %c0_16 = arith.constant 0 : index
    %28 = vector.load %arg7[%c17, %c0_15, %c0_16] : memref<18x18x16xf32, #tpu.memory_space<vmem>>, vector<1x18x16xf32>
    tpu.vector_store %arg7[%c17, %c0_15, %c0_16], %25 {strides = array<i32>} : memref<18x18x16xf32, #tpu.memory_space<vmem>>, vector<1x18x16xf32>,
    %c0_17 = arith.constant 0 : index
    %c0_18 = arith.constant 0 : index
    %c0_19 = arith.constant 0 : index
    %29 = vector.load %arg7[%c0_17, %c0_18, %c0_19] : memref<18x18x16xf32, #tpu.memory_space<vmem>>, vector<18x1x16xf32>
    tpu.vector_store %arg7[%c0_17, %c0_18, %c0_19], %26 {strides = array<i32>} : memref<18x18x16xf32, #tpu.memory_space<vmem>>, vector<18x1x16xf32>,
    %c0_20 = arith.constant 0 : index
    %c17_21 = arith.constant 17 : index
    %c0_22 = arith.constant 0 : index
    %30 = vector.load %arg7[%c0_20, %c17_21, %c0_22] : memref<18x18x16xf32, #tpu.memory_space<vmem>>, vector<18x1x16xf32>
    tpu.vector_store %arg7[%c0_20, %c17_21, %c0_22], %26 {strides = array<i32>} : memref<18x18x16xf32, #tpu.memory_space<vmem>>, vector<18x1x16xf32>,
    %31 = vector.shape_cast %24 : vector<256x16xf32> to vector<16x16x16xf32>
    %c1 = arith.constant 1 : index
    %c1_23 = arith.constant 1 : index
    %c0_24 = arith.constant 0 : index
    %32 = vector.load %arg7[%c1, %c1_23, %c0_24] : memref<18x18x16xf32, #tpu.memory_space<vmem>>, vector<16x16x16xf32>
    tpu.vector_store %arg7[%c1, %c1_23, %c0_24], %31 {strides = array<i32>} : memref<18x18x16xf32, #tpu.memory_space<vmem>>, vector<16x16x16xf32>,
    %cst_25 = arith.constant 0.000000e+00 : f32
    %33 = vector.broadcast %cst_25 : f32 to vector<256x16xf32>
    %c0_26 = arith.constant 0 : index
    %c0_27 = arith.constant 0 : index
    %c0_28 = arith.constant 0 : index
    %34 = vector.load %arg7[%c0_26, %c0_27, %c0_28] : memref<18x18x16xf32, #tpu.memory_space<vmem>>, vector<16x16x16xf32>
    %35 = vector.shape_cast %34 : vector<16x16x16xf32> to vector<256x16xf32>
    %c0_29 = arith.constant 0 : index
    %c0_30 = arith.constant 0 : index
    %c0_31 = arith.constant 0 : index
    %36 = vector.load %arg2[%c0_29, %c0_30, %c0_31] : memref<9x16x16xf32, #tpu.memory_space<vmem>>, vector<1x16x16xf32>
    %37 = vector.shape_cast %36 : vector<1x16x16xf32> to vector<16x16xf32>
    %cst_32 = arith.constant dense<0.000000e+00> : vector<256x16xf32>
    %38 = tpu.matmul %35, %37, %cst_32 {dimension_numbers = #tpu.dot_dimension_numbers<[1], [0], [0], [1], [0, 0, 1, 1], [], []>} : vector<256x16xf32>, vector<16x16xf32>, vector<256x16xf32> -> vector<256x16xf32>
    %39 = arith.addf %33, %38 : vector<256x16xf32>
    %c0_33 = arith.constant 0 : index
    %c1_34 = arith.constant 1 : index
    %c0_35 = arith.constant 0 : index
    %40 = vector.load %arg7[%c0_33, %c1_34, %c0_35] : memref<18x18x16xf32, #tpu.memory_space<vmem>>, vector<16x16x16xf32>
    %41 = vector.shape_cast %40 : vector<16x16x16xf32> to vector<256x16xf32>
    %c1_36 = arith.constant 1 : index
    %c0_37 = arith.constant 0 : index
    %c0_38 = arith.constant 0 : index
    %42 = vector.load %arg2[%c1_36, %c0_37, %c0_38] : memref<9x16x16xf32, #tpu.memory_space<vmem>>, vector<1x16x16xf32>
    %43 = vector.shape_cast %42 : vector<1x16x16xf32> to vector<16x16xf32>
    %cst_39 = arith.constant dense<0.000000e+00> : vector<256x16xf32>
    %44 = tpu.matmul %41, %43, %cst_39 {dimension_numbers = #tpu.dot_dimension_numbers<[1], [0], [0], [1], [0, 0, 1, 1], [], []>} : vector<256x16xf32>, vector<16x16xf32>, vector<256x16xf32> -> vector<256x16xf32>
    %45 = arith.addf %39, %44 : vector<256x16xf32>
    %c0_40 = arith.constant 0 : index
    %c2 = arith.constant 2 : index
    %c0_41 = arith.constant 0 : index
    %46 = vector.load %arg7[%c0_40, %c2, %c0_41] : memref<18x18x16xf32, #tpu.memory_space<vmem>>, vector<16x16x16xf32>
    %47 = vector.shape_cast %46 : vector<16x16x16xf32> to vector<256x16xf32>
    %c2_42 = arith.constant 2 : index
    %c0_43 = arith.constant 0 : index
    %c0_44 = arith.constant 0 : index
    %48 = vector.load %arg2[%c2_42, %c0_43, %c0_44] : memref<9x16x16xf32, #tpu.memory_space<vmem>>, vector<1x16x16xf32>
    %49 = vector.shape_cast %48 : vector<1x16x16xf32> to vector<16x16xf32>
    %cst_45 = arith.constant dense<0.000000e+00> : vector<256x16xf32>
    %50 = tpu.matmul %47, %49, %cst_45 {dimension_numbers = #tpu.dot_dimension_numbers<[1], [0], [0], [1], [0, 0, 1, 1], [], []>} : vector<256x16xf32>, vector<16x16xf32>, vector<256x16xf32> -> vector<256x16xf32>
    %51 = arith.addf %45, %50 : vector<256x16xf32>
    %c1_46 = arith.constant 1 : index
    %c0_47 = arith.constant 0 : index
    %c0_48 = arith.constant 0 : index
    %52 = vector.load %arg7[%c1_46, %c0_47, %c0_48] : memref<18x18x16xf32, #tpu.memory_space<vmem>>, vector<16x16x16xf32>
    %53 = vector.shape_cast %52 : vector<16x16x16xf32> to vector<256x16xf32>
    %c3 = arith.constant 3 : index
    %c0_49 = arith.constant 0 : index
    %c0_50 = arith.constant 0 : index
    %54 = vector.load %arg2[%c3, %c0_49, %c0_50] : memref<9x16x16xf32, #tpu.memory_space<vmem>>, vector<1x16x16xf32>
    %55 = vector.shape_cast %54 : vector<1x16x16xf32> to vector<16x16xf32>
    %cst_51 = arith.constant dense<0.000000e+00> : vector<256x16xf32>
    %56 = tpu.matmul %53, %55, %cst_51 {dimension_numbers = #tpu.dot_dimension_numbers<[1], [0], [0], [1], [0, 0, 1, 1], [], []>} : vector<256x16xf32>, vector<16x16xf32>, vector<256x16xf32> -> vector<256x16xf32>
    %57 = arith.addf %51, %56 : vector<256x16xf32>
    %c1_52 = arith.constant 1 : index
    %c1_53 = arith.constant 1 : index
    %c0_54 = arith.constant 0 : index
    %58 = vector.load %arg7[%c1_52, %c1_53, %c0_54] : memref<18x18x16xf32, #tpu.memory_space<vmem>>, vector<16x16x16xf32>
    %59 = vector.shape_cast %58 : vector<16x16x16xf32> to vector<256x16xf32>
    %c4 = arith.constant 4 : index
    %c0_55 = arith.constant 0 : index
    %c0_56 = arith.constant 0 : index
    %60 = vector.load %arg2[%c4, %c0_55, %c0_56] : memref<9x16x16xf32, #tpu.memory_space<vmem>>, vector<1x16x16xf32>
    %61 = vector.shape_cast %60 : vector<1x16x16xf32> to vector<16x16xf32>
    %cst_57 = arith.constant dense<0.000000e+00> : vector<256x16xf32>
    %62 = tpu.matmul %59, %61, %cst_57 {dimension_numbers = #tpu.dot_dimension_numbers<[1], [0], [0], [1], [0, 0, 1, 1], [], []>} : vector<256x16xf32>, vector<16x16xf32>, vector<256x16xf32> -> vector<256x16xf32>
    %63 = arith.addf %57, %62 : vector<256x16xf32>
    %c1_58 = arith.constant 1 : index
    %c2_59 = arith.constant 2 : index
    %c0_60 = arith.constant 0 : index
    %64 = vector.load %arg7[%c1_58, %c2_59, %c0_60] : memref<18x18x16xf32, #tpu.memory_space<vmem>>, vector<16x16x16xf32>
    %65 = vector.shape_cast %64 : vector<16x16x16xf32> to vector<256x16xf32>
    %c5 = arith.constant 5 : index
    %c0_61 = arith.constant 0 : index
    %c0_62 = arith.constant 0 : index
    %66 = vector.load %arg2[%c5, %c0_61, %c0_62] : memref<9x16x16xf32, #tpu.memory_space<vmem>>, vector<1x16x16xf32>
    %67 = vector.shape_cast %66 : vector<1x16x16xf32> to vector<16x16xf32>
    %cst_63 = arith.constant dense<0.000000e+00> : vector<256x16xf32>
    %68 = tpu.matmul %65, %67, %cst_63 {dimension_numbers = #tpu.dot_dimension_numbers<[1], [0], [0], [1], [0, 0, 1, 1], [], []>} : vector<256x16xf32>, vector<16x16xf32>, vector<256x16xf32> -> vector<256x16xf32>
    %69 = arith.addf %63, %68 : vector<256x16xf32>
    %c2_64 = arith.constant 2 : index
    %c0_65 = arith.constant 0 : index
    %c0_66 = arith.constant 0 : index
    %70 = vector.load %arg7[%c2_64, %c0_65, %c0_66] : memref<18x18x16xf32, #tpu.memory_space<vmem>>, vector<16x16x16xf32>
    %71 = vector.shape_cast %70 : vector<16x16x16xf32> to vector<256x16xf32>
    %c6 = arith.constant 6 : index
    %c0_67 = arith.constant 0 : index
    %c0_68 = arith.constant 0 : index
    %72 = vector.load %arg2[%c6, %c0_67, %c0_68] : memref<9x16x16xf32, #tpu.memory_space<vmem>>, vector<1x16x16xf32>
    %73 = vector.shape_cast %72 : vector<1x16x16xf32> to vector<16x16xf32>
    %cst_69 = arith.constant dense<0.000000e+00> : vector<256x16xf32>
    %74 = tpu.matmul %71, %73, %cst_69 {dimension_numbers = #tpu.dot_dimension_numbers<[1], [0], [0], [1], [0, 0, 1, 1], [], []>} : vector<256x16xf32>, vector<16x16xf32>, vector<256x16xf32> -> vector<256x16xf32>
    %75 = arith.addf %69, %74 : vector<256x16xf32>
    %c2_70 = arith.constant 2 : index
    %c1_71 = arith.constant 1 : index
    %c0_72 = arith.constant 0 : index
    %76 = vector.load %arg7[%c2_70, %c1_71, %c0_72] : memref<18x18x16xf32, #tpu.memory_space<vmem>>, vector<16x16x16xf32>
    %77 = vector.shape_cast %76 : vector<16x16x16xf32> to vector<256x16xf32>
    %c7 = arith.constant 7 : index
    %c0_73 = arith.constant 0 : index
    %c0_74 = arith.constant 0 : index
    %78 = vector.load %arg2[%c7, %c0_73, %c0_74] : memref<9x16x16xf32, #tpu.memory_space<vmem>>, vector<1x16x16xf32>
    %79 = vector.shape_cast %78 : vector<1x16x16xf32> to vector<16x16xf32>
    %cst_75 = arith.constant dense<0.000000e+00> : vector<256x16xf32>
    %80 = tpu.matmul %77, %79, %cst_75 {dimension_numbers = #tpu.dot_dimension_numbers<[1], [0], [0], [1], [0, 0, 1, 1], [], []>} : vector<256x16xf32>, vector<16x16xf32>, vector<256x16xf32> -> vector<256x16xf32>
    %81 = arith.addf %75, %80 : vector<256x16xf32>
    %c2_76 = arith.constant 2 : index
    %c2_77 = arith.constant 2 : index
    %c0_78 = arith.constant 0 : index
    %82 = vector.load %arg7[%c2_76, %c2_77, %c0_78] : memref<18x18x16xf32, #tpu.memory_space<vmem>>, vector<16x16x16xf32>
    %83 = vector.shape_cast %82 : vector<16x16x16xf32> to vector<256x16xf32>
    %c8 = arith.constant 8 : index
    %c0_79 = arith.constant 0 : index
    %c0_80 = arith.constant 0 : index
    %84 = vector.load %arg2[%c8, %c0_79, %c0_80] : memref<9x16x16xf32, #tpu.memory_space<vmem>>, vector<1x16x16xf32>
    %85 = vector.shape_cast %84 : vector<1x16x16xf32> to vector<16x16xf32>
    %cst_81 = arith.constant dense<0.000000e+00> : vector<256x16xf32>
    %86 = tpu.matmul %83, %85, %cst_81 {dimension_numbers = #tpu.dot_dimension_numbers<[1], [0], [0], [1], [0, 0, 1, 1], [], []>} : vector<256x16xf32>, vector<16x16xf32>, vector<256x16xf32> -> vector<256x16xf32>
    %87 = arith.addf %81, %86 : vector<256x16xf32>
    %c0_82 = arith.constant 0 : index
    %c0_83 = arith.constant 0 : index
    %88 = vector.load %arg3[%c0_82, %c0_83] : memref<1x16xf32, #tpu.memory_space<vmem>>, vector<1x16xf32>
    %89 = vector.broadcast %88 : vector<1x16xf32> to vector<256x16xf32>
    %90 = arith.addf %87, %89 : vector<256x16xf32>
    %c0_84 = arith.constant 0 : index
    %c0_85 = arith.constant 0 : index
    %c0_86 = arith.constant 0 : index
    %91 = vector.load %arg6[%c0_84, %c0_85, %c0_86] : memref<1x256x16xf32, #tpu.memory_space<vmem>>, vector<1x256x16xf32>
    %92 = vector.shape_cast %91 : vector<1x256x16xf32> to vector<256x16xf32>
    %93 = vector.shape_cast %90 : vector<256x16xf32> to vector<1x256x16xf32>
    tpu.vector_store %arg6[%c0_84, %c0_85, %c0_86], %93 {strides = array<i32>} : memref<1x256x16xf32, #tpu.memory_space<vmem>>, vector<1x256x16xf32>,
    return
  }
  func.func @transform_0(%arg0: i32) -> (i32, i32, i32) {
    %c0_i32 = arith.constant 0 : i32
    %c0_i32_0 = arith.constant 0 : i32
    %c0_i32_1 = arith.constant 0 : i32
    return %arg0, %c0_i32, %c0_i32_0 : i32, i32, i32
  }
  func.func @transform_1(%arg0: i32) -> (i32, i32, i32) {
    %c0_i32 = arith.constant 0 : i32
    %c0_i32_0 = arith.constant 0 : i32
    %c0_i32_1 = arith.constant 0 : i32
    %c0_i32_2 = arith.constant 0 : i32
    return %c0_i32, %c0_i32_0, %c0_i32_1 : i32, i32, i32
  }
  func.func @transform_2(%arg0: i32) -> (i32, i32) {
    %c0_i32 = arith.constant 0 : i32
    %c0_i32_0 = arith.constant 0 : i32
    %c0_i32_1 = arith.constant 0 : i32
    return %c0_i32, %c0_i32_0 : i32, i32
  }
  func.func @transform_3(%arg0: i32) -> (i32, i32) {
    %c0_i32 = arith.constant 0 : i32
    %c0_i32_0 = arith.constant 0 : i32
    %c0_i32_1 = arith.constant 0 : i32
    return %c0_i32, %c0_i32_0 : i32, i32
  }
  func.func @transform_4(%arg0: i32) -> (i32, i32) {
    %c0_i32 = arith.constant 0 : i32
    %c0_i32_0 = arith.constant 0 : i32
    %c0_i32_1 = arith.constant 0 : i32
    return %c0_i32, %c0_i32_0 : i32, i32
  }
  func.func @transform_5(%arg0: i32) -> (i32, i32, i32) {
    %c0_i32 = arith.constant 0 : i32
    %c0_i32_0 = arith.constant 0 : i32
    %c0_i32_1 = arith.constant 0 : i32
    return %arg0, %c0_i32, %c0_i32_0 : i32, i32, i32
  }
}

</mosaic_0001>

<bundles_post_ra>
// kernel: tpu_custom_call.1
= control target key start
LH: loop header
LB: loop body
LE: loop exit
PB: predicated region body
PF: predicated region fallthrough
CT: control target
= control target key end

     0   :  { %10 = vsyncpa [#allocation4], 0  ;;  %s7870_s0 = inlined_call_operand.hbm [shape: f32[2,256,16], index: 0, kind: input, shape index: {}]   ;;  %s7871_s1 = inlined_call_operand.hbm [shape: f32[9,16,16], index: 1, kind: input, shape index: {}]   ;;  %s7872_s2 = inlined_call_operand.hbm [shape: f32[1,16], index: 2, kind: input, shape index: {}]   ;;  %s7873_s3 = inlined_call_operand.hbm [shape: f32[1,16], index: 3, kind: input, shape index: {}]   ;;  %s7874_s4 = inlined_call_operand.hbm [shape: f32[1,16], index: 4, kind: input, shape index: {}]   ;;  %s7875_s5 = inlined_call_operand.hbm [shape: f32[2,256,16], index: 5, kind: output, shape index: {}]  }
   0x1   :  { %12 = vsyncpa [#allocation4 + $0x1], 0 }
   0x2   :  { %13 = vsyncpa [#allocation7], 0 }
   0x3   :  { %14 = vsyncpa [#allocation10], 0 }
   0x4   :  { %15 = vsyncpa [#allocation5], 0 }
   0x5   :  { %17 = vsyncpa [#allocation5 + $0x1], 0  ;;  %s6098_s18 = smov 0   ;;  %s6100_s19 = smov 0  }
   0x6   :  { %s6102_s20 = smov 0   ;;  %s6104_s21 = smov 0  }
   0x7 LB: > { %s6119_s22 = sadd.s32 4294967295, %s6055_s21   ;;  %s4356_s23 = sadd.s32 4294967294, %s6055_s21   ;;  %s6055_s21 = sphi %s6104_s21, %s8008_s21   ;;  %s6051_s20 = sphi %s6102_s20, %s8007_s20   ;;  %s6047_s19 = sphi %s6100_s19, %s8006_s19   ;;  %s6043_s18 = sphi %s6098_s18, %s8005_s18  }
   0x8   : > { %p43_p0 = scmp.ne.s32.totalorder %s6047_s19, %s6043_s18  ;;  %p7876_p1 = scmp.eq.s32.totalorder %s6119_s22, 0 }
   0x9   : > { %p157_p3 = scmp.eq.s32.totalorder %s4356_s23, 1  ;;  %p4357_p5 = scmp.ge.s32.totalorder %s6055_s21, 1 }
   0xa   : > { %p6128_p4 = por %p7876_p1, %p43_p0  ;;  %p164_p7 = scmp.lt.s32.totalorder %s6055_s21, 3 }
   0xb   : > { %p6133_p6 = por %p157_p3, %p43_p0  ;;  %s6057_s27 = smov [#allocation6]  }
   0xc   : > { %s7926_s24 = scalar_select %p6128_p4, 1, 0 }
   0xd   : > { %s7927_s25 = scalar_select %p6133_p6, 1, 0 }
   0xe   : > { %p6138_p8 = pnand %p4357_p5, %p164_p7  ;;  %s176_s28 = sshll.u32 %s6057_s27, 4  ;;  %s6142_s28 = int_to_ptr.vmem [resolvable:$true] %s176_s28 }
   0xf   : > { %s6058_s30 = smov [#allocation9]   ;;  %s6059_s7 = smov [#allocation8]  }
  0x10   : > { %s7928_s26 = scalar_select %p6138_p8, 1, 0 }
  0x11   : > { %p5765_p9 = pneg %p6138_p8  ;;  %s201_s6 = sshll.u32 %s6058_s30, 4  ;;  %s6153_s6 = int_to_ptr.vmem [resolvable:$true] %s201_s6 }
  0x12   : > { %s6155_s8 = sshll.u32 %s6059_s7, 4  ;;  %s5839_s11 = scalar_lea.hbm %s7871_s1, 2304  ;;  %s191_s8 = int_to_ptr.vmem [resolvable:$true] %s6155_s8 }
  0x13   : > { %p6149_p11 = pnand %p5765_p9, %p7876_p1  ;;  %p5840_p12 = scmp.ne.s32.totalorder %s7871_s1, %s5839_s11 }
  0x14   : > { %p5846_p5 = scmp.lt.u32.totalorder %s5839_s11, %s7871_s1 }
  0x15   : > { %p6165_p13 = pneg %p6149_p11 }
  0x17   : > { %p5842_p0 = pnand %p6165_p13, %p5840_p12 }
  0x19   : > { %p5843_p3 = pneg %p5842_p0 }
  0x1b   : > { %p5848_p7 = pnand %p5846_p5, %p5843_p3 }
  0x1d   : > { %5851 = shalt.err (!%p5848_p7)
}
  0x1e   : > { %s5852_s17 = scalar_lea.vmem %s6142_s28, 2304  ;;  %p5860_p2 = scmp.lt.s32.totalorder %s6142_s28, %s6142_s28 }
  0x1f   : > { %p5853_p9 = scmp.ne.s32.totalorder %s6142_s28, %s5852_s17  ;;  %p5861_p6 = scmp.lt.s32.totalorder %s5852_s17, %s5852_s17 }
  0x21   : > { %p5855_p10 = pnand %p5853_p9, %p6165_p13  ;;  %p5862_p12 = por %p5861_p6, %p5860_p2 }
  0x23   : > { %p5856_p1 = pneg %p5855_p10 }
  0x25   : > { %p5863_p0 = pnand %p5862_p12, %p5856_p1 }
  0x27   : > { %5866 = shalt.err (!%p5863_p0)
}
  0x28   : > { %s6060_s23 = smov 128   ;;  %s6061_s27 = smov 8  }
  0x29   : > { %5768 = dma.hbm_to_vmem [thread:$0]  (!%p6149_p11), %s7871_s1, 2304, %s6142_s28, [#allocation7], %s6060_s23, %s6060_s23, %s6061_s27  }
  0x2a   : > { %s5867_s11 = scalar_lea.hbm %s7873_s3, 16 }
  0x2b   : > { %p5868_p1 = scmp.ne.s32.totalorder %s7873_s3, %s5867_s11  ;;  %p5874_p10 = scmp.lt.u32.totalorder %s5867_s11, %s7873_s3 }
  0x2d   : > { %p5870_p2 = pnand %p5868_p1, %p6165_p13 }
  0x2f   : > { %p5871_p6 = pneg %p5870_p2 }
  0x31   : > { %p5876_p3 = pnand %p5874_p10, %p5871_p6 }
  0x33   : > { %5879 = shalt.err (!%p5876_p3)
}
  0x34   : > { %s5880_s28 = scalar_lea.vmem %s6153_s6, 16  ;;  %s5887_s17 = scalar_lea.vmem %s6153_s6, 32 }
  0x35   : > { %p5881_p5 = scmp.ne.s32.totalorder %s6153_s6, %s5880_s28  ;;  %p5888_p12 = scmp.lt.s32.totalorder %s6153_s6, %s6153_s6 }
  0x36   : > { %p5889_p0 = scmp.lt.s32.totalorder %s5887_s17, %s5880_s28 }
  0x37   : > { %p5883_p7 = pnand %p5881_p5, %p6165_p13 }
  0x38   : > { %p5890_p1 = por %p5889_p0, %p5888_p12 }
  0x39   : > { %p5884_p9 = pneg %p5883_p7 }
  0x3b   : > { %p5891_p2 = pnand %p5890_p1, %p5884_p9 }
  0x3d   : > { %5894 = shalt.err (!%p5891_p2)
}
  0x3e   : > { %5774 = dma.hbm_to_vmem [thread:$0]  (!%p6149_p11), %s7873_s3, 16, %s6153_s6, [#allocation10]  }
  0x3f   : > { %s5895_s11 = scalar_lea.hbm %s7872_s2, 16 }
  0x40   : > { %p5896_p6 = scmp.ne.s32.totalorder %s7872_s2, %s5895_s11  ;;  %p5902_p5 = scmp.lt.u32.totalorder %s5895_s11, %s7872_s2 }
  0x42   : > { %p5898_p10 = pnand %p5896_p6, %p6165_p13 }
  0x44   : > { %p5899_p3 = pneg %p5898_p10 }
  0x46   : > { %p5904_p7 = pnand %p5902_p5, %p5899_p3 }
  0x48   : > { %5907 = shalt.err (!%p5904_p7)
}
  0x49   : > { %s5908_s28 = scalar_lea.vmem %s191_s8, 16  ;;  %s5915_s6 = scalar_lea.vmem %s191_s8, 32 }
  0x4a   : > { %p5909_p9 = scmp.ne.s32.totalorder %s191_s8, %s5908_s28  ;;  %p5916_p1 = scmp.lt.s32.totalorder %s191_s8, %s191_s8 }
  0x4b   : > { %p5917_p2 = scmp.lt.s32.totalorder %s5915_s6, %s5908_s28 }
  0x4c   : > { %p5911_p12 = pnand %p5909_p9, %p6165_p13 }
  0x4d   : > { %p5918_p4 = por %p5917_p2, %p5916_p1 }
  0x4e   : > { %p5912_p0 = pneg %p5911_p12 }
  0x50   : > { %p5919_p8 = pnand %p5918_p4, %p5912_p0 }
  0x52   : > { %5922 = shalt.err (!%p5919_p8)
}
  0x53   : > { %5771 = dma.hbm_to_vmem [thread:$0]  (!%p6149_p11), %s7872_s2, 16, %s191_s8, [#allocation7]  }
  0x54   : > { %s6062_s7 = smov [#allocation11]   ;;  %s5923_s12 = scalar_lea.hbm %s7874_s4, 16 }
  0x55   : > { %s212_s9 = sshll.u32 %s6062_s7, 4  ;;  %p5924_p6 = scmp.ne.s32.totalorder %s7874_s4, %s5923_s12  ;;  %s213_s9 = int_to_ptr.vmem [resolvable:$true] %s212_s9 }
  0x56   : > { %p5930_p10 = scmp.lt.u32.totalorder %s5923_s12, %s7874_s4 }
  0x57   : > { %p5926_p4 = pnand %p5924_p6, %p6165_p13 }
  0x59   : > { %p5927_p8 = pneg %p5926_p4 }
  0x5b   : > { %p5932_p3 = pnand %p5930_p10, %p5927_p8 }
  0x5d   : > { %5935 = shalt.err (!%p5932_p3)
}
  0x5e   : > { %s5936_s8 = scalar_lea.vmem %s213_s9, 16  ;;  %s5943_s6 = scalar_lea.vmem %s213_s9, 32 }
  0x5f   : > { %p5937_p5 = scmp.ne.s32.totalorder %s213_s9, %s5936_s8  ;;  %p5944_p12 = scmp.lt.s32.totalorder %s213_s9, %s213_s9 }
  0x60   : > { %p5945_p0 = scmp.lt.s32.totalorder %s5943_s6, %s5936_s8 }
  0x61   : > { %p5939_p7 = pnand %p5937_p5, %p6165_p13 }
  0x62   : > { %p5946_p1 = por %p5945_p0, %p5944_p12 }
  0x63   : > { %p5940_p9 = pneg %p5939_p7 }
  0x65   : > { %p5947_p2 = pnand %p5946_p1, %p5940_p9 }
  0x67   : > { %5950 = shalt.err (!%p5947_p2)
}
  0x68   : > { %5777 = dma.hbm_to_vmem [thread:$0]  (!%p6149_p11), %s7874_s4, 16, %s213_s9, [#allocation10]  }
  0x69   : > { %s6251_s14 = sadd.s32 1, %s6055_s21   ;;  %s30_s7 = sadd.s32 1, %s6051_s20 }
  0x6a   : > { %s27_s29 = ssub.s32 %s6055_s21, %s6251_s14  ;;  %p37_p13 = scmp.ne.s32.totalorder %s6051_s20, %s6047_s19 }
  0x6b   : > { %p28_p6 = scmp.eq.s32.totalorder %s27_s29, 0  ;;  %p38_p4 = scmp.eq.s32.totalorder %s6055_s21, 0 }
  0x6c   : > { %p7931_p8 = scmp.eq.s32.totalorder %s6119_s22, 1  ;;  %p5790_p3 = scmp.lt.s32.totalorder %s6055_s21, 2 }
  0x6d   : > { %s6267_s11 = scalar_select %p28_p6, %s6051_s20, %s30_s7  }
  0x6e   : > { %p6261_p10 = por %p7931_p8, %p37_p13  ;;  %p39_p5 = por %p38_p4, %p37_p13 }
  0x6f   : > { %s223_s12 = sand.u32 1, %s6051_s20   ;;  %s4669_s9 = sshll.u32 %s6055_s21, 12 }
  0x70   : > { %s4363_s13 = sshll.u32 %s223_s12, 8  ;;  %s6274_s28 = scalar_lea.hbm %s7870_s0, %s4669_s9 }
  0x71   : > { %s227_s8 = scalar_lea.vmem [#allocation3], %s4363_s13  ;;  %p6278_p11 = pnand %p5790_p3, %p39_p5 }
  0x72   : > { %s234_s6 = sshll.u32 %s227_s8, 4  ;;  %s6282_s30 = scalar_lea.sflag [#allocation4], %s223_s12  ;;  %s6276_s6 = int_to_ptr.vmem [resolvable:$true] %s234_s6 }
  0x73   : > { %s5951_s7 = scalar_lea.hbm %s6274_s28, 4096  ;;  %p5953_p9 = pneg %p6278_p11 }
  0x74   : > { %p5952_p7 = scmp.ne.s32.totalorder %s6274_s28, %s5951_s7  ;;  %s5956_s9 = scalar_lea.hbm %s7870_s0, 8192 }
  0x75   : > { %p5957_p1 = scmp.lt.u32.totalorder %s6274_s28, %s7870_s0  ;;  %p5958_p2 = scmp.lt.u32.totalorder %s5956_s9, %s5951_s7 }
  0x76   : > { %p5954_p12 = pnand %p5953_p9, %p5952_p7  ;;  %p5960_p6 = scmp.lt.u32.totalorder %s5951_s7, %s6274_s28 }
  0x77   : > { %p5959_p13 = por %p5958_p2, %p5957_p1 }
  0x78   : > { %p5955_p0 = pneg %p5954_p12 }
  0x79   : > { %p5961_p4 = por %p5960_p6, %p5959_p13 }
  0x7b   : > { %p5962_p8 = pnand %p5961_p4, %p5955_p0 }
  0x7d   : > { %5965 = shalt.err (!%p5962_p8)
}
  0x7e   : > { %s5966_s12 = scalar_lea.vmem %s6276_s6, 4096  ;;  %s6063_s8 = smov [#allocation3]  }
  0x7f   : > { %p5967_p3 = scmp.ne.s32.totalorder %s6276_s6, %s5966_s12  ;;  %s5971_s29 = sshll.u32 %s6063_s8, 4  ;;  %s5972_s29 = int_to_ptr.vmem [resolvable:$false] %s5971_s29 }
  0x80   : > { %s5973_s13 = scalar_lea.vmem %s5972_s29, 8192  ;;  %p5974_p12 = scmp.lt.s32.totalorder %s6276_s6, %s5972_s29 }
  0x81   : > { %p5969_p5 = pnand %p5967_p3, %p5953_p9  ;;  %p5975_p1 = scmp.lt.s32.totalorder %s5973_s13, %s5966_s12 }
  0x83   : > { %p5970_p7 = pneg %p5969_p5  ;;  %p5976_p2 = por %p5975_p1, %p5974_p12 }
  0x85   : > { %p5977_p13 = pnand %p5976_p2, %p5970_p7 }
  0x87   : > { %5980 = shalt.err (!%p5977_p13)
}
  0x88   : > { %5781 = dma.hbm_to_vmem [thread:$0]  (!%p6278_p11), %s6274_s28, 4096, %s6276_s6, %s6282_s30, %s6060_s23, %s6060_s23, %s6061_s27  }
  0x89   : > { %p7934_p9 = scmp.ne.s32.totalorder %s7928_s26, 0 }
  0x8b   : > { %246 = sbr.rel (%p7934_p9) target bundleno = 1311 (0x51f), region = 40 }
  0x92   : > { %s6316_s7 = sand.u32 1, %s6047_s19   ;;  %p7935_p0 = scmp.ne.s32.totalorder %s7926_s24, 0 }
  0x93   : > { %s4367_s9 = sshll.u32 %s6316_s7, 8  ;;  %s249_s15 = scalar_lea.sflag [#allocation4], %s6316_s7 }
  0x94   : > { %s6322_s17 = scalar_lea.vmem [#allocation3], %s4367_s9 }
  0x95   : > { %6026 = dma.done.wait (%p7935_p0), %s249_s15, 4096  }
  0x96   : > { %6028 = vsyncadd (%p7935_p0), %s249_s15, 4294963200  ;;  %p7936_p11 = scmp.eq.s32.totalorder %s6119_s22, 0 }
  0x98   : > { %6030 = dma.done.wait (%p7936_p11), [#allocation7], 2320   ;;  %p7937_p6 = pmov %p7936_p11 }
  0x9a   : > { %6032 = vsyncadd (%p7937_p6), [#allocation7], 4294964976  ;;  %p7938_p4 = pmov %p7937_p6 }
  0x9c   : > { %6034 = dma.done.wait (%p7938_p4), [#allocation10], 32   ;;  %p7939_p8 = pmov %p7938_p4 }
  0x9d   : > { %vm327_vm0 = vcmask 130048   ;;  %v6337_v0 = vld [vmem:[%s6322_s17] sm:$0xff]  ;;  %v6340_v1 = vld [vmem:[%s6322_s17 + $0x8] sm:$0xff]  ;;  %v6343_v2 = vld [vmem:[%s6322_s17 + $0x10] sm:$0xff]  ;;  %vm656_vm1 = vcmask 123904   ;;  %vm662_vm2 = vcmask 122880  }
  0x9e   : > { %6036 = vsyncadd (%p7939_p8), [#allocation10], 4294967264  ;;  %v6346_v3 = vld [vmem:[%s6322_s17 + $0x18] sm:$0xff]  ;;  %v328_v4 = vsel %vm327_vm0, %v6337_v0, 0.0  ;;  %v329_v5 = vsel %vm327_vm0, %v6340_v1, 0.0  ;;  %v331_v6 = vsel %vm327_vm0, %v6343_v2, 0.0 }
  0x9f   : > { %v6355_v7 = vld [vmem:[%s6322_s17 + $0x20] sm:$0xff]  ;;  %v330_v8 = vadd.f32 %v329_v5, %v328_v4  ;;  %v333_v9 = vsel %vm327_vm0, %v6346_v3, 0.0  ;;  %v6360_v10 = vld [vmem:[%s6322_s17 + $0x28] sm:$0xff]  ;;  %v6365_v13 = vld [vmem:[%s6322_s17 + $0x30] sm:$0xff]  ;;  %s7722_s30 = scalar_lea.vmem [#allocation12], %s4367_s9  ;;  %s4670_s16 = sshll.u32 %s6119_s22, 12 }
  0xa0   : > { %v335_v12 = vsel %vm327_vm0, %v6355_v7, 0.0  ;;  %v337_v15 = vsel %vm327_vm0, %v6360_v10, 0.0  ;;  %v6370_v16 = vld [vmem:[%s6322_s17 + $0x38] sm:$0xff]  ;;  %v339_v18 = vsel %vm327_vm0, %v6365_v13, 0.0  ;;  %v6375_v19 = vld [vmem:[%s6322_s17 + $0x40] sm:$0xff]  ;;  %v6380_v22 = vld [vmem:[%s6322_s17 + $0x48] sm:$0xff]  ;;  %s7819_s13 = scalar_lea.hbm %s7875_s5, %s4670_s16 }
  0xa1   : > { %v332_v11 = vadd.f32 %v331_v6, %v330_v8  ;;  %v341_v21 = vsel %vm327_vm0, %v6370_v16, 0.0  ;;  %v343_v24 = vsel %vm327_vm0, %v6375_v19, 0.0  ;;  %v6385_v25 = vld [vmem:[%s6322_s17 + $0x50] sm:$0xff]  ;;  %v345_v27 = vsel %vm327_vm0, %v6380_v22, 0.0  ;;  %v6390_v28 = vld [vmem:[%s6322_s17 + $0x58] sm:$0xff]  ;;  %v6395_v31 = vld [vmem:[%s6322_s17 + $0x60] sm:$0xff] }
  0xa2   : > { %v347_v30 = vsel %vm327_vm0, %v6385_v25, 0.0  ;;  %v349_v33 = vsel %vm327_vm0, %v6390_v28, 0.0  ;;  %v6400_v34 = vld [vmem:[%s6322_s17 + $0x68] sm:$0xff]  ;;  %v351_v36 = vsel %vm327_vm0, %v6395_v31, 0.0  ;;  %v6405_v37 = vld [vmem:[%s6322_s17 + $0x70] sm:$0xff]  ;;  %v6410_v40 = vld [vmem:[%s6322_s17 + $0x78] sm:$0xff] }
  0xa3   : > { %v334_v14 = vadd.f32 %v333_v9, %v332_v11  ;;  %v353_v39 = vsel %vm327_vm0, %v6400_v34, 0.0  ;;  %v355_v42 = vsel %vm327_vm0, %v6405_v37, 0.0  ;;  %v6415_v43 = vld [vmem:[%s6322_s17 + $0x80] sm:$0xff]  ;;  %v357_v45 = vsel %vm327_vm0, %v6410_v40, 0.0  ;;  %v6420_v46 = vld [vmem:[%s6322_s17 + $0x88] sm:$0xff]  ;;  %v6425_v49 = vld [vmem:[%s6322_s17 + $0x90] sm:$0xff] }
  0xa4   : > { %v359_v48 = vsel %vm327_vm0, %v6415_v43, 0.0  ;;  %v361_v51 = vsel %vm327_vm0, %v6420_v46, 0.0  ;;  %v6430_v52 = vld [vmem:[%s6322_s17 + $0x98] sm:$0xff]  ;;  %v363_v54 = vsel %vm327_vm0, %v6425_v49, 0.0  ;;  %v6435_v55 = vld [vmem:[%s6322_s17 + $0xa0] sm:$0xff]  ;;  %v6440_v58 = vld [vmem:[%s6322_s17 + $0xa8] sm:$0xff] }
  0xa5   : > { %v336_v17 = vadd.f32 %v335_v12, %v334_v14  ;;  %v365_v57 = vsel %vm327_vm0, %v6430_v52, 0.0  ;;  %v367_v60 = vsel %vm327_vm0, %v6435_v55, 0.0  ;;  %v6445_v61 = vld [vmem:[%s6322_s17 + $0xb0] sm:$0xff]  ;;  %v369_v63 = vsel %vm327_vm0, %v6440_v58, 0.0  ;;  %v6450_v4 = vld [vmem:[%s6322_s17 + $0xb8] sm:$0xff]  ;;  %v6455_v8 = vld [vmem:[%s6322_s17 + $0xc0] sm:$0xff] }
  0xa6   : > { %v371_v6 = vsel %vm327_vm0, %v6445_v61, 0.0  ;;  %v373_v11 = vsel %vm327_vm0, %v6450_v4, 0.0  ;;  %v6460_v12 = vld [vmem:[%s6322_s17 + $0xc8] sm:$0xff]  ;;  %s4245_s12 = sshll.u32 %s7722_s30, 4  ;;  %s4232_s22 = scalar_lea.sflag [#allocation5], %s6316_s7  ;;  %s7821_s12 = int_to_ptr.vmem [resolvable:$true] %s4245_s12 }
  0xa7   : > { %v338_v20 = vadd.f32 %v337_v15, %v336_v17  ;;  %v375_v15 = vsel %vm327_vm0, %v6455_v8, 0.0  ;;  %v6465_v17 = vld [vmem:[%s6322_s17 + $0xd0] sm:$0xff]  ;;  %s5981_s9 = scalar_lea.vmem %s7821_s12, 4096  ;;  %s6065_s15 = smov [#allocation12]  }
  0xa8   : > { %p5982_p3 = scmp.ne.s32.totalorder %s7821_s12, %s5981_s9 }
  0xa9   : > { %v340_v23 = vadd.f32 %v339_v18, %v338_v20  ;;  %v377_v20 = vsel %vm327_vm0, %v6460_v12, 0.0 }
  0xaa   : > { %p5983_p5 = pnand %p5982_p3, %p6261_p10 }
  0xab   : > { %v342_v26 = vadd.f32 %v341_v21, %v340_v23  ;;  %v6470_v21 = vld [vmem:[%s6322_s17 + $0xd8] sm:$0xff] }
  0xac   : > { %p5984_p7 = pneg %p5983_p5 }
  0xad   : > { %v344_v29 = vadd.f32 %v343_v24, %v342_v26  ;;  %v379_v24 = vsel %vm327_vm0, %v6465_v17, 0.0  ;;  %v6475_v26 = vld [vmem:[%s6322_s17 + $0xe0] sm:$0xff] }
  0xaf   : > { %v346_v32 = vadd.f32 %v345_v27, %v344_v29  ;;  %v381_v29 = vsel %vm327_vm0, %v6470_v21, 0.0 }
  0xb1   : > { %v348_v35 = vadd.f32 %v347_v30, %v346_v32  ;;  %v6480_v30 = vld [vmem:[%s6322_s17 + $0xe8] sm:$0xff] }
  0xb3   : > { %v350_v38 = vadd.f32 %v349_v33, %v348_v35  ;;  %v383_v33 = vsel %vm327_vm0, %v6475_v26, 0.0  ;;  %v6485_v35 = vld [vmem:[%s6322_s17 + $0xf0] sm:$0xff] }
  0xb5   : > { %v352_v41 = vadd.f32 %v351_v36, %v350_v38  ;;  %v385_v38 = vsel %vm327_vm0, %v6480_v30, 0.0 }
  0xb7   : > { %v354_v44 = vadd.f32 %v353_v39, %v352_v41  ;;  %v6490_v39 = vld [vmem:[%s6322_s17 + $0xf8] sm:$0xff]  ;;  %s5985_s17 = sshll.u32 %s6065_s15, 4  ;;  %s5986_s17 = int_to_ptr.vmem [resolvable:$false] %s5985_s17 }
  0xb8   : > { %p5988_p12 = scmp.lt.s32.totalorder %s7821_s12, %s5986_s17 }
  0xb9   : > { %v356_v47 = vadd.f32 %v355_v42, %v354_v44  ;;  %v387_v42 = vsel %vm327_vm0, %v6485_v35, 0.0 }
  0xbb   : > { %v358_v50 = vadd.f32 %v357_v45, %v356_v47  ;;  %v389_v45 = vsel %vm327_vm0, %v6490_v39, 0.0 }
  0xbd   : > { %v360_v53 = vadd.f32 %v359_v48, %v358_v50 }
  0xbf   : > { %v362_v56 = vadd.f32 %v361_v51, %v360_v53 }
  0xc1   : > { %v364_v59 = vadd.f32 %v363_v54, %v362_v56 }
  0xc3   : > { %v366_v62 = vadd.f32 %v365_v57, %v364_v59 }
  0xc5   : > { %v368_v5 = vadd.f32 %v367_v60, %v366_v62 }
  0xc7   : > { %v370_v9 = vadd.f32 %v369_v63, %v368_v5 }
  0xc9   : > { %v372_v14 = vadd.f32 %v371_v6, %v370_v9 }
  0xcb   : > { %v374_v18 = vadd.f32 %v373_v11, %v372_v14 }
  0xcd   : > { %v376_v23 = vadd.f32 %v375_v15, %v374_v18 }
  0xcf   : > { %v378_v27 = vadd.f32 %v377_v20, %v376_v23 }
  0xd1   : > { %v380_v32 = vadd.f32 %v379_v24, %v378_v27 }
  0xd3   : > { %v382_v36 = vadd.f32 %v381_v29, %v380_v32 }
  0xd5   : > { %v384_v41 = vadd.f32 %v383_v33, %v382_v36 }
  0xd7   : > { %v386_v44 = vadd.f32 %v385_v38, %v384_v41 }
  0xd9   : > { %v388_v47 = vadd.f32 %v387_v42, %v386_v44 }
  0xdb   : > { %v390_v48 = vadd.f32 %v389_v45, %v388_v47 }
  0xdd   : > { %391 = vadd.xlane.f32.xlu0 %v390_v48 }
 0x16a   : > { %v392_v50 = vpop.xlane.xlu0 %391 }
 0x16b   : > { %v393_v51 = vrot.slane %v392_v50, 4 }
 0x16d   : > { %v394_v53 = vadd.f32 %v393_v51, %v392_v50 }
 0x16f   : > { %v395_v54 = vrot.slane %v394_v53, 2 }
 0x171   : > { %v396_v56 = vadd.f32 %v395_v54, %v394_v53 }
 0x173   : > { %v397_v57 = vrot.slane %v396_v56, 1 }
 0x175   : > { %v398_v59 = vadd.f32 %v397_v57, %v396_v56 }
 0x177   : > { %5739 = vpush %v398_v59 }
 0x1a8   : > { %s5740_s24 = spop %5739 }
 0x1a9   : > { %s400_s26 = smul.f32 0.00024414063, %s5740_s24  ;;  %s5987_s24 = scalar_lea.vmem %s5986_s17, 8192 }
 0x1aa   : > { %p5989_p1 = scmp.lt.s32.totalorder %s5987_s24, %s5981_s9 }
 0x1ab   : > { %v6496_v60 = vstv %s400_s26 }
 0x1ac   : > { %v6500_v62 = vsub.f32 %v6337_v0, %v6496_v60  ;;  %v6504_v63 = vsub.f32 %v6340_v1, %v6496_v60  ;;  %v6508_v5 = vsub.f32 %v6343_v2, %v6496_v60  ;;  %v6512_v6 = vsub.f32 %v6346_v3, %v6496_v60  ;;  %p5990_p2 = por %p5989_p1, %p5988_p12 }
 0x1ad   : > { %v6520_v0 = vsub.f32 %v6355_v7, %v6496_v60  ;;  %v6526_v2 = vsub.f32 %v6360_v10, %v6496_v60  ;;  %v6534_v20 = vsub.f32 %v6365_v13, %v6496_v60  ;;  %v6541_v10 = vsub.f32 %v6370_v16, %v6496_v60 }
 0x1ae   : > { %v434_v9 = vmul.f32 %v6500_v62, %v6500_v62  ;;  %v435_v11 = vmul.f32 %v6504_v63, %v6504_v63  ;;  %v436_v1 = vmul.f32 %v6508_v5, %v6508_v5  ;;  %v437_v3 = vmul.f32 %v6512_v6, %v6512_v6  ;;  %p5991_p13 = pnand %p5990_p2, %p5984_p7 }
 0x1af   : > { %v438_v7 = vmul.f32 %v6520_v0, %v6520_v0  ;;  %v439_v27 = vmul.f32 %v6526_v2, %v6526_v2  ;;  %v6548_v13 = vsub.f32 %v6375_v19, %v6496_v60  ;;  %v440_v33 = vmul.f32 %v6534_v20, %v6534_v20 }
 0x1b0   : > { %v466_v14 = vsel %vm327_vm0, %v434_v9, 0.0  ;;  %v467_v15 = vsel %vm327_vm0, %v435_v11, 0.0  ;;  %v469_v23 = vsel %vm327_vm0, %v436_v1, 0.0  ;;  %v471_v29 = vsel %vm327_vm0, %v437_v3, 0.0 }
 0x1b1   : > { %v468_v18 = vadd.f32 %v467_v15, %v466_v14  ;;  %v473_v36 = vsel %vm327_vm0, %v438_v7, 0.0  ;;  %v6555_v16 = vsub.f32 %v6380_v22, %v6496_v60  ;;  %v441_v41 = vmul.f32 %v6541_v10, %v6541_v10 }
 0x1b2   : > { %v475_v42 = vsel %vm327_vm0, %v439_v27, 0.0  ;;  %v6562_v19 = vsub.f32 %v6385_v25, %v6496_v60  ;;  %v442_v45 = vmul.f32 %v6548_v13, %v6548_v13  ;;  %v477_v47 = vsel %vm327_vm0, %v440_v33, 0.0 }
 0x1b3   : > { %v470_v24 = vadd.f32 %v469_v23, %v468_v18  ;;  %v6569_v22 = vsub.f32 %v6390_v28, %v6496_v60  ;;  %v443_v50 = vmul.f32 %v6555_v16, %v6555_v16  ;;  %v479_v51 = vsel %vm327_vm0, %v441_v41, 0.0 }
 0x1b4   : > { %v6576_v25 = vsub.f32 %v6395_v31, %v6496_v60  ;;  %v444_v54 = vmul.f32 %v6562_v19, %v6562_v19  ;;  %v481_v56 = vsel %vm327_vm0, %v442_v45, 0.0  ;;  %v6583_v28 = vsub.f32 %v6400_v34, %v6496_v60 }
 0x1b5   : > { %v472_v32 = vadd.f32 %v471_v29, %v470_v24  ;;  %v445_v59 = vmul.f32 %v6569_v22, %v6569_v22  ;;  %v483_v9 = vsel %vm327_vm0, %v443_v50, 0.0  ;;  %v6590_v31 = vsub.f32 %v6405_v37, %v6496_v60 }
 0x1b6   : > { %v446_v1 = vmul.f32 %v6576_v25, %v6576_v25  ;;  %v485_v3 = vsel %vm327_vm0, %v444_v54, 0.0  ;;  %v6597_v34 = vsub.f32 %v6410_v40, %v6496_v60  ;;  %v447_v15 = vmul.f32 %v6583_v28, %v6583_v28 }
 0x1b7   : > { %v474_v38 = vadd.f32 %v473_v36, %v472_v32  ;;  %v487_v18 = vsel %vm327_vm0, %v445_v59, 0.0  ;;  %v6604_v37 = vsub.f32 %v6415_v43, %v6496_v60  ;;  %v448_v23 = vmul.f32 %v6590_v31, %v6590_v31 }
 0x1b8   : > { %v489_v24 = vsel %vm327_vm0, %v446_v1, 0.0  ;;  %v6611_v40 = vsub.f32 %v6420_v46, %v6496_v60  ;;  %v449_v29 = vmul.f32 %v6597_v34, %v6597_v34  ;;  %v491_v32 = vsel %vm327_vm0, %v447_v15, 0.0 }
 0x1b9   : > { %v476_v44 = vadd.f32 %v475_v42, %v474_v38  ;;  %v6618_v43 = vsub.f32 %v6425_v49, %v6496_v60  ;;  %v450_v36 = vmul.f32 %v6604_v37, %v6604_v37  ;;  %v493_v38 = vsel %vm327_vm0, %v448_v23, 0.0 }
 0x1ba   : > { %v6625_v46 = vsub.f32 %v6430_v52, %v6496_v60  ;;  %v451_v42 = vmul.f32 %v6611_v40, %v6611_v40  ;;  %v6632_v49 = vsub.f32 %v6435_v55, %v6496_v60  ;;  %v6639_v52 = vsub.f32 %v6440_v58, %v6496_v60 }
 0x1bb   : > { %v478_v48 = vadd.f32 %v477_v47, %v476_v44  ;;  %v495_v44 = vsel %vm327_vm0, %v449_v29, 0.0  ;;  %v452_v47 = vmul.f32 %v6618_v43, %v6618_v43  ;;  %v6646_v55 = vsub.f32 %v6445_v61, %v6496_v60 }
 0x1bc   : > { %v6653_v58 = vsub.f32 %v6450_v4, %v6496_v60  ;;  %v6660_v61 = vsub.f32 %v6455_v8, %v6496_v60  ;;  %v6667_v4 = vsub.f32 %v6460_v12, %v6496_v60  ;;  %v6674_v8 = vsub.f32 %v6465_v17, %v6496_v60 }
 0x1bd   : > { %v480_v53 = vadd.f32 %v479_v51, %v478_v48  ;;  %v497_v48 = vsel %vm327_vm0, %v450_v36, 0.0  ;;  %v453_v51 = vmul.f32 %v6625_v46, %v6625_v46  ;;  %v6681_v12 = vsub.f32 %v6470_v21, %v6496_v60 }
 0x1be   : > { %v6688_v17 = vsub.f32 %v6475_v26, %v6496_v60  ;;  %v6695_v21 = vsub.f32 %v6480_v30, %v6496_v60  ;;  %v6702_v26 = vsub.f32 %v6485_v35, %v6496_v60  ;;  %v6709_v30 = vsub.f32 %v6490_v39, %v6496_v60 }
 0x1bf   : > { %v482_v57 = vadd.f32 %v481_v56, %v480_v53  ;;  %v499_v53 = vsel %vm327_vm0, %v451_v42, 0.0  ;;  %v454_v56 = vmul.f32 %v6632_v49, %v6632_v49 }
 0x1c0   : > { %v464_v35 = vmul.f32 %v6702_v26, %v6702_v26 }
 0x1c1   : > { %v484_v11 = vadd.f32 %v483_v9, %v482_v57  ;;  %v501_v57 = vsel %vm327_vm0, %v452_v47, 0.0  ;;  %v455_v9 = vmul.f32 %v6639_v52, %v6639_v52 }
 0x1c2   : > { %v525_v39 = vsel %vm327_vm0, %v464_v35, 0.0 }
 0x1c3   : > { %v486_v14 = vadd.f32 %v485_v3, %v484_v11  ;;  %v503_v11 = vsel %vm327_vm0, %v453_v51, 0.0  ;;  %v456_v3 = vmul.f32 %v6646_v55, %v6646_v55 }
 0x1c5   : > { %v488_v7 = vadd.f32 %v487_v18, %v486_v14  ;;  %v505_v14 = vsel %vm327_vm0, %v454_v56, 0.0  ;;  %v457_v18 = vmul.f32 %v6653_v58, %v6653_v58 }
 0x1c7   : > { %v490_v27 = vadd.f32 %v489_v24, %v488_v7  ;;  %v507_v7 = vsel %vm327_vm0, %v455_v9, 0.0  ;;  %v458_v24 = vmul.f32 %v6660_v61, %v6660_v61  ;;  %v465_v9 = vmul.f32 %v6709_v30, %v6709_v30 }
 0x1c9   : > { %v492_v33 = vadd.f32 %v491_v32, %v490_v27  ;;  %v509_v27 = vsel %vm327_vm0, %v456_v3, 0.0  ;;  %v459_v32 = vmul.f32 %v6667_v4, %v6667_v4  ;;  %v527_v3 = vsel %vm327_vm0, %v465_v9, 0.0  ;;  %v1477_v9 = vld [vmem:[#allocation6 + $0x28] sm:$0xff] }
 0x1cb   : > { %v494_v41 = vadd.f32 %v493_v38, %v492_v33  ;;  %v511_v33 = vsel %vm327_vm0, %v457_v18, 0.0  ;;  %v460_v38 = vmul.f32 %v6674_v8, %v6674_v8 }
 0x1cd   : > { %v496_v45 = vadd.f32 %v495_v44, %v494_v41  ;;  %v513_v41 = vsel %vm327_vm0, %v458_v24, 0.0  ;;  %v461_v44 = vmul.f32 %v6681_v12, %v6681_v12 }
 0x1cf   : > { %v498_v50 = vadd.f32 %v497_v48, %v496_v45  ;;  %v515_v45 = vsel %vm327_vm0, %v459_v32, 0.0  ;;  %v462_v48 = vmul.f32 %v6688_v17, %v6688_v17  ;;  %v6064_v32 = vmov 0.0  }
 0x1d0   : > { %654 = vst.msk [vmem:[#allocation2] sm:$0xff] %vm327_vm0, %v6064_v32  ;;  %655 = vst.msk [vmem:[#allocation2 + $0x8] sm:$0xff] %vm327_vm0, %v6064_v32 }
 0x1d1   : > { %v500_v54 = vadd.f32 %v499_v53, %v498_v50  ;;  %v517_v50 = vsel %vm327_vm0, %v460_v38, 0.0  ;;  %v463_v53 = vmul.f32 %v6695_v21, %v6695_v21  ;;  %659 = vst.msk [vmem:[#allocation2 + $0x198] sm:$0xff] %vm327_vm0, %v6064_v32  ;;  %660 = vst.msk [vmem:[#allocation2 + $0x1a0] sm:$0xff] %vm327_vm0, %v6064_v32 }
 0x1d2   : > { %657 = vst.msk [vmem:[#allocation2 + $0x10] sm:$0x3] %vm656_vm1, %v6064_v32  ;;  %661 = vst.msk [vmem:[#allocation2 + $0x1a8] sm:$0x3] %vm656_vm1, %v6064_v32 }
 0x1d3   : > { %v502_v59 = vadd.f32 %v501_v57, %v500_v54  ;;  %v519_v54 = vsel %vm327_vm0, %v461_v44, 0.0  ;;  %v521_v57 = vsel %vm327_vm0, %v462_v48, 0.0  ;;  %681 = vst.msk [vmem:[#allocation2 + $0x11] sm:$0x1] %vm662_vm2, %v6064_v32  ;;  %663 = vst.msk [vmem:[#allocation2] sm:$0x1] %vm662_vm2, %v6064_v32 }
 0x1d4   : > { %664 = vst.msk [vmem:[#allocation2 + $0x18] sm:$0x1] %vm662_vm2, %v6064_v32  ;;  %665 = vst.msk [vmem:[#allocation2 + $0x30] sm:$0x1] %vm662_vm2, %v6064_v32  ;;  %v764_v48 = vld [vmem:[#allocation6] sm:$0xff] }
 0x1d5   : > { %v504_v1 = vadd.f32 %v503_v11, %v502_v59  ;;  %v523_v11 = vsel %vm327_vm0, %v463_v53, 0.0  ;;  %666 = vst.msk [vmem:[#allocation2 + $0x48] sm:$0x1] %vm662_vm2, %v6064_v32  ;;  %667 = vst.msk [vmem:[#allocation2 + $0x60] sm:$0x1] %vm662_vm2, %v6064_v32 }
 0x1d6   : > { %668 = vst.msk [vmem:[#allocation2 + $0x78] sm:$0x1] %vm662_vm2, %v6064_v32  ;;  %669 = vst.msk [vmem:[#allocation2 + $0x90] sm:$0x1] %vm662_vm2, %v6064_v32 }
 0x1d7   : > { %v506_v15 = vadd.f32 %v505_v14, %v504_v1  ;;  %670 = vst.msk [vmem:[#allocation2 + $0xa8] sm:$0x1] %vm662_vm2, %v6064_v32  ;;  %671 = vst.msk [vmem:[#allocation2 + $0xc0] sm:$0x1] %vm662_vm2, %v6064_v32 }
 0x1d8   : > { %672 = vst.msk [vmem:[#allocation2 + $0xd8] sm:$0x1] %vm662_vm2, %v6064_v32  ;;  %673 = vst.msk [vmem:[#allocation2 + $0xf0] sm:$0x1] %vm662_vm2, %v6064_v32 }
 0x1d9   : > { %v508_v23 = vadd.f32 %v507_v7, %v506_v15  ;;  %674 = vst.msk [vmem:[#allocation2 + $0x108] sm:$0x1] %vm662_vm2, %v6064_v32  ;;  %675 = vst.msk [vmem:[#allocation2 + $0x120] sm:$0x1] %vm662_vm2, %v6064_v32 }
 0x1da   : > { %676 = vst.msk [vmem:[#allocation2 + $0x138] sm:$0x1] %vm662_vm2, %v6064_v32  ;;  %677 = vst.msk [vmem:[#allocation2 + $0x150] sm:$0x1] %vm662_vm2, %v6064_v32 }
 0x1db   : > { %v510_v29 = vadd.f32 %v509_v27, %v508_v23  ;;  %678 = vst.msk [vmem:[#allocation2 + $0x168] sm:$0x1] %vm662_vm2, %v6064_v32  ;;  %679 = vst.msk [vmem:[#allocation2 + $0x180] sm:$0x1] %vm662_vm2, %v6064_v32 }
 0x1dc   : > { %680 = vst.msk [vmem:[#allocation2 + $0x198] sm:$0x1] %vm662_vm2, %v6064_v32  ;;  %682 = vst.msk [vmem:[#allocation2 + $0x29] sm:$0x1] %vm662_vm2, %v6064_v32 }
 0x1dd   : > { %v512_v36 = vadd.f32 %v511_v33, %v510_v29  ;;  %v799_v33 = vld [vmem:[#allocation6 + $0x10] sm:$0xff]  ;;  %683 = vst.msk [vmem:[#allocation2 + $0x41] sm:$0x1] %vm662_vm2, %v6064_v32  ;;  %684 = vst.msk [vmem:[#allocation2 + $0x59] sm:$0x1] %vm662_vm2, %v6064_v32 }
 0x1de   : > { %685 = vst.msk [vmem:[#allocation2 + $0x71] sm:$0x1] %vm662_vm2, %v6064_v32  ;;  %686 = vst.msk [vmem:[#allocation2 + $0x89] sm:$0x1] %vm662_vm2, %v6064_v32 }
 0x1df   : > { %v514_v42 = vadd.f32 %v513_v41, %v512_v36  ;;  %v800_v36 = vld [vmem:[#allocation6 + $0x18] sm:$0xff]  ;;  %v2252_v41 = vld [vmem:[#allocation6 + $0x40] sm:$0xff]  ;;  %687 = vst.msk [vmem:[#allocation2 + $0xa1] sm:$0x1] %vm662_vm2, %v6064_v32  ;;  %688 = vst.msk [vmem:[#allocation2 + $0xb9] sm:$0x1] %vm662_vm2, %v6064_v32 }
 0x1e0   : > { %v5445_v38 = vpack.c.bf16 %v800_v36, %v799_v33  ;;  %689 = vst.msk [vmem:[#allocation2 + $0xd1] sm:$0x1] %vm662_vm2, %v6064_v32  ;;  %690 = vst.msk [vmem:[#allocation2 + $0xe9] sm:$0x1] %vm662_vm2, %v6064_v32 }
 0x1e1   : > { %v516_v47 = vadd.f32 %v515_v45, %v514_v42  ;;  %v2253_v42 = vld [vmem:[#allocation6 + $0x48] sm:$0xff]  ;;  %691 = vst.msk [vmem:[#allocation2 + $0x101] sm:$0x1] %vm662_vm2, %v6064_v32  ;;  %692 = vst.msk [vmem:[#allocation2 + $0x119] sm:$0x1] %vm662_vm2, %v6064_v32  ;;  %v766_v45 = vld [vmem:[#allocation2 + $0x1] sm:$0xff] }
 0x1e2   : > { %693 = vst.msk [vmem:[#allocation2 + $0x131] sm:$0x1] %vm662_vm2, %v6064_v32  ;;  %694 = vst.msk [vmem:[#allocation2 + $0x149] sm:$0x1] %vm662_vm2, %v6064_v32  ;;  %5446 = vmatprep.subr.bf16.mxu1 %v5445_v38  ;;  %v6762_v44 = vpack.c.bf16 %v2253_v42, %v2252_v41  ;;  %4981 = vmatprep.mubr.msk.f32.mxu1 %vm327_vm0, %v766_v45 }
 0x1e3   : > { %v518_v51 = vadd.f32 %v517_v50, %v516_v47  ;;  %695 = vst.msk [vmem:[#allocation2 + $0x161] sm:$0x1] %vm662_vm2, %v6064_v32  ;;  %696 = vst.msk [vmem:[#allocation2 + $0x179] sm:$0x1] %vm662_vm2, %v6064_v32  ;;  %5448 = vmatpush3.bf16.msra.mxu1 %v5445_v38  ;;  %v767_v47 = vld [vmem:[#allocation2 + $0x9] sm:$0xff]  ;;  %v765_v50 = vld [vmem:[#allocation6 + $0x8] sm:$0xff] }
 0x1e4   : > { %697 = vst.msk [vmem:[#allocation2 + $0x191] sm:$0x1] %vm662_vm2, %v6064_v32  ;;  %698 = vst.msk [vmem:[#allocation2 + $0x1a9] sm:$0x1] %vm662_vm2, %v6064_v32  ;;  %5462 = vmatprep.subr.bf16.mxu0 %v6762_v44  ;;  %v5449_v53 = vpack.c.bf16 %v765_v50, %v764_v48 }
 0x1e5   : > { %v520_v56 = vadd.f32 %v519_v54, %v518_v51  ;;  %5464 = vmatpush3.bf16.msra.mxu0 %v6762_v44  ;;  %v2640_v51 = vld [vmem:[#allocation6 + $0x50] sm:$0xff]  ;;  %v2641_v54 = vld [vmem:[#allocation6 + $0x58] sm:$0xff] }
 0x1e6   : > { %4982 = vmatmul.mubr.msk.f32.vlgmr.msra.gmra.mrb[0].mxu1 %vm327_vm0, %v767_v47  ;;  %5450 = vmatprep.subr.bf16.mxu1 %v5449_v53 }
 0x1e7   : > { %v522_v59 = vadd.f32 %v521_v57, %v520_v56  ;;  %v6768_v56 = vpack.c.bf16 %v2641_v54, %v2640_v51  ;;  %5452 = vmatpush3.bf16.msra.mxu1 %v5449_v53 }
 0x1e9   : > { %v524_v1 = vadd.f32 %v523_v11, %v522_v59  ;;  %5466 = vmatprep.subr.bf16.mxu0 %v6768_v56  ;;  %v1476_v59 = vld [vmem:[#allocation6 + $0x20] sm:$0xff] }
 0x1ea   : > { %v6771_v11 = vpack.c.bf16 %v1477_v9, %v1476_v59 }
 0x1eb   : > { %v526_v60 = vadd.f32 %v525_v39, %v524_v1 }
 0x1ec   : > { %5454 = vmatprep.subr.bf16.mxu1 %v6771_v11 }
 0x1ed   : > { %v528_v14 = vadd.f32 %v527_v3, %v526_v60 }
 0x1ef   : > { %529 = vadd.xlane.f32.xlu0 %v528_v14 }
 0x27c   : > { %v530_v15 = vpop.xlane.xlu0 %529 }
 0x27d   : > { %v531_v18 = vrot.slane %v530_v15, 4 }
 0x27f   : > { %v532_v7 = vadd.f32 %v531_v18, %v530_v15 }
 0x281   : > { %v533_v23 = vrot.slane %v532_v7, 2 }
 0x283   : > { %v534_v24 = vadd.f32 %v533_v23, %v532_v7 }
 0x285   : > { %v535_v27 = vrot.slane %v534_v24, 1 }
 0x287   : > { %v536_v29 = vadd.f32 %v535_v27, %v534_v24 }
 0x289   : > { %5741 = vpush %v536_v29 }
 0x2ba   : > { %s5742_s23 = spop %5741 }
 0x2bb   : > { %s538_s27 = smul.f32 0.00024414063, %s5742_s23 }
 0x2bd   : > { %s539_s28 = sadd.f32 1e-05, %s538_s27 }
 0x2bf   : > { %v540_v35 = vstv %s539_s28 }
 0x2c0   : > { %5837 = vrsqrt.f32 %v540_v35 }
 0x2ca   : > { %v5838_v57 = vpop.eup %5837 }
 0x2cb   : > { %5743 = vpush %v5838_v57 }
 0x2fc   : > { %s5744_s6 = spop %5743 }
 0x2fd   : > { %v6774_v1 = vstv %s5744_s6 }
 0x2fe   : > { %v6778_v39 = vmul.f32 %v6774_v1, %v6576_v25  ;;  %v6782_v60 = vmul.f32 %v6774_v1, %v6583_v28  ;;  %v558_v3 = vmul.f32 %v6774_v1, %v6590_v31  ;;  %v559_v14 = vmul.f32 %v6774_v1, %v6597_v34  ;;  %v6796_v28 = vld [vmem:[#allocation9] ss:$0 sm:$0xff] }
 0x2ff   : > { %v560_v15 = vmul.f32 %v6774_v1, %v6604_v37  ;;  %v561_v18 = vmul.f32 %v6774_v1, %v6611_v40  ;;  %v562_v25 = vmul.f32 %v6774_v1, %v6618_v43  ;;  %v563_v7 = vmul.f32 %v6774_v1, %v6625_v46 }
 0x300   : > { %v564_v31 = vmul.f32 %v6774_v1, %v6632_v49  ;;  %v565_v34 = vmul.f32 %v6774_v1, %v6639_v52  ;;  %v566_v37 = vmul.f32 %v6774_v1, %v6646_v55  ;;  %v567_v40 = vmul.f32 %v6774_v1, %v6653_v58 }
 0x301   : > { %v568_v43 = vmul.f32 %v6774_v1, %v6660_v61  ;;  %v569_v46 = vmul.f32 %v6774_v1, %v6667_v4  ;;  %v570_v23 = vmul.f32 %v6774_v1, %v6674_v8  ;;  %v571_v49 = vmul.f32 %v6774_v1, %v6681_v12 }
 0x302   : > { %v572_v52 = vmul.f32 %v6774_v1, %v6688_v17  ;;  %v573_v55 = vmul.f32 %v6774_v1, %v6695_v21  ;;  %v574_v58 = vmul.f32 %v6774_v1, %v6702_v26  ;;  %v575_v61 = vmul.f32 %v6774_v1, %v6709_v30  ;;  %v6830_v17 = vld [vmem:[#allocation11] ss:$0 sm:$0xff] }
 0x303   : > { %v6823_v4 = vmul.f32 %v6796_v28, %v558_v3  ;;  %v6826_v8 = vmul.f32 %v6796_v28, %v559_v14  ;;  %v599_v12 = vmul.f32 %v6796_v28, %v560_v15  ;;  %v600_v24 = vmul.f32 %v6796_v28, %v561_v18 }
 0x304   : > { %v601_v21 = vmul.f32 %v6796_v28, %v562_v25  ;;  %v602_v27 = vmul.f32 %v6796_v28, %v563_v7  ;;  %v603_v26 = vmul.f32 %v6796_v28, %v564_v31  ;;  %v604_v30 = vmul.f32 %v6796_v28, %v565_v34 }
 0x305   : > { %v605_v29 = vmul.f32 %v6796_v28, %v566_v37  ;;  %v606_v32 = vmul.f32 %v6796_v28, %v567_v40  ;;  %v607_v33 = vmul.f32 %v6796_v28, %v568_v43  ;;  %v608_v36 = vmul.f32 %v6796_v28, %v569_v46 }
 0x306   : > { %v609_v38 = vmul.f32 %v6796_v28, %v570_v23  ;;  %v610_v41 = vmul.f32 %v6796_v28, %v571_v49  ;;  %v611_v42 = vmul.f32 %v6796_v28, %v572_v52  ;;  %v612_v45 = vmul.f32 %v6796_v28, %v573_v55 }
 0x307   : > { %v613_v47 = vmul.f32 %v6796_v28, %v574_v58  ;;  %v614_v48 = vmul.f32 %v6796_v28, %v575_v61  ;;  %v638_v50 = vadd.f32 %v6830_v17, %v599_v12  ;;  %v639_v51 = vadd.f32 %v6830_v17, %v600_v24 }
 0x308   : > { %v640_v53 = vadd.f32 %v6830_v17, %v601_v21  ;;  %v641_v54 = vadd.f32 %v6830_v17, %v602_v27  ;;  %v642_v35 = vadd.f32 %v6830_v17, %v603_v26  ;;  %v643_v57 = vadd.f32 %v6830_v17, %v604_v30 }
 0x309   : > { %v644_v59 = vadd.f32 %v6830_v17, %v605_v29  ;;  %v645_v9 = vadd.f32 %v6830_v17, %v606_v32  ;;  %v646_v3 = vadd.f32 %v6830_v17, %v607_v33  ;;  %v647_v14 = vadd.f32 %v6830_v17, %v608_v36  ;;  %716 = vst.msk [vmem:[#allocation2 + $0xd9] sm:$0xff] %vm327_vm0, %v638_v50 }
 0x30a   : > { %717 = vst.msk [vmem:[#allocation2 + $0xe1] sm:$0xff] %vm327_vm0, %v639_v51  ;;  %v648_v15 = vadd.f32 %v6830_v17, %v609_v38  ;;  %v649_v18 = vadd.f32 %v6830_v17, %v610_v41  ;;  %v650_v25 = vadd.f32 %v6830_v17, %v611_v42  ;;  %v651_v7 = vadd.f32 %v6830_v17, %v612_v45 }
 0x30b   : > { %721 = vst.msk [vmem:[#allocation2 + $0x111] sm:$0xff] %vm327_vm0, %v643_v57  ;;  %718 = vst.msk [vmem:[#allocation2 + $0xf1] sm:$0xff] %vm327_vm0, %v640_v53  ;;  %v652_v31 = vadd.f32 %v6830_v17, %v613_v47  ;;  %v653_v34 = vadd.f32 %v6830_v17, %v614_v48  ;;  %v544_v37 = vmul.f32 %v6774_v1, %v6500_v62  ;;  %v3030_v48 = vld [vmem:[#allocation6 + $0x68] sm:$0xff] }
 0x30c   : > { %719 = vst.msk [vmem:[#allocation2 + $0xf9] sm:$0xff] %vm327_vm0, %v641_v54  ;;  %720 = vst.msk [vmem:[#allocation2 + $0x109] sm:$0xff] %vm327_vm0, %v642_v35  ;;  %v545_v40 = vmul.f32 %v6774_v1, %v6504_v63  ;;  %v546_v43 = vmul.f32 %v6774_v1, %v6508_v5  ;;  %v547_v46 = vmul.f32 %v6774_v1, %v6512_v6 }
 0x30d   : > { %722 = vst.msk [vmem:[#allocation2 + $0x121] sm:$0xff] %vm327_vm0, %v644_v59  ;;  %723 = vst.msk [vmem:[#allocation2 + $0x129] sm:$0xff] %vm327_vm0, %v645_v9  ;;  %v548_v62 = vmul.f32 %v6774_v1, %v6520_v0  ;;  %v549_v63 = vmul.f32 %v6774_v1, %v6526_v2  ;;  %v583_v23 = vmul.f32 %v6796_v28, %v544_v37  ;;  %v3418_v37 = vld [vmem:[#allocation6 + $0x78] sm:$0xff] }
 0x30e   : > { %724 = vst.msk [vmem:[#allocation2 + $0x139] sm:$0xff] %vm327_vm0, %v646_v3  ;;  %725 = vst.msk [vmem:[#allocation2 + $0x141] sm:$0xff] %vm327_vm0, %v647_v14  ;;  %v584_v49 = vmul.f32 %v6796_v28, %v545_v40  ;;  %v550_v5 = vmul.f32 %v6774_v1, %v6534_v20  ;;  %v551_v6 = vmul.f32 %v6774_v1, %v6541_v10 }
 0x30f   : > { %726 = vst.msk [vmem:[#allocation2 + $0x151] sm:$0xff] %vm327_vm0, %v648_v15  ;;  %727 = vst.msk [vmem:[#allocation2 + $0x159] sm:$0xff] %vm327_vm0, %v649_v18  ;;  %v585_v52 = vmul.f32 %v6796_v28, %v546_v43  ;;  %v586_v0 = vmul.f32 %v6796_v28, %v547_v46  ;;  %v587_v2 = vmul.f32 %v6796_v28, %v548_v62 }
 0x310   : > { %728 = vst.msk [vmem:[#allocation2 + $0x169] sm:$0xff] %vm327_vm0, %v650_v25  ;;  %729 = vst.msk [vmem:[#allocation2 + $0x171] sm:$0xff] %vm327_vm0, %v651_v7  ;;  %v588_v55 = vmul.f32 %v6796_v28, %v549_v63  ;;  %v622_v58 = vadd.f32 %v6830_v17, %v583_v23  ;;  %v623_v61 = vadd.f32 %v6830_v17, %v584_v49  ;;  %v7041_v40 = vld [vmem:[#allocation2 + $0xd9] sm:$0xff] }
 0x311   : > { %730 = vst.msk [vmem:[#allocation2 + $0x181] sm:$0xff] %vm327_vm0, %v652_v31  ;;  %731 = vst.msk [vmem:[#allocation2 + $0x189] sm:$0xff] %vm327_vm0, %v653_v34  ;;  %v589_v12 = vmul.f32 %v6796_v28, %v550_v5  ;;  %v590_v24 = vmul.f32 %v6796_v28, %v551_v6  ;;  %v624_v20 = vadd.f32 %v6830_v17, %v585_v52  ;;  %v3417_v34 = vld [vmem:[#allocation6 + $0x70] sm:$0xff] }
 0x312   : > { %v625_v10 = vadd.f32 %v6830_v17, %v586_v0  ;;  %v626_v21 = vadd.f32 %v6830_v17, %v587_v2  ;;  %v627_v27 = vadd.f32 %v6830_v17, %v588_v55  ;;  %700 = vst.msk [vmem:[#allocation2 + $0x19] sm:$0xff] %vm327_vm0, %v622_v58  ;;  %701 = vst.msk [vmem:[#allocation2 + $0x21] sm:$0xff] %vm327_vm0, %v623_v61  ;;  %v7051_v62 = vld [vmem:[#allocation2 + $0xe1] sm:$0xff]  ;;  %v7059_v23 = vld [vmem:[#allocation2 + $0xf1] sm:$0xff] }
 0x313   : > { %v628_v26 = vadd.f32 %v6830_v17, %v589_v12  ;;  %v629_v30 = vadd.f32 %v6830_v17, %v590_v24  ;;  %v552_v29 = vmul.f32 %v6774_v1, %v6548_v13  ;;  %v553_v32 = vmul.f32 %v6774_v1, %v6555_v16  ;;  %702 = vst.msk [vmem:[#allocation2 + $0x31] sm:$0xff] %vm327_vm0, %v624_v20  ;;  %v7068_v5 = vld [vmem:[#allocation2 + $0xf9] sm:$0xff]  ;;  %v7076_v52 = vld [vmem:[#allocation2 + $0x109] sm:$0xff]  ;;  %v7084_v2 = vld [vmem:[#allocation2 + $0x111] sm:$0xff] }
 0x314   : > { %703 = vst.msk [vmem:[#allocation2 + $0x39] sm:$0xff] %vm327_vm0, %v625_v10  ;;  %704 = vst.msk [vmem:[#allocation2 + $0x49] sm:$0xff] %vm327_vm0, %v626_v21  ;;  %v554_v33 = vmul.f32 %v6774_v1, %v6562_v19  ;;  %v555_v36 = vmul.f32 %v6774_v1, %v6569_v22  ;;  %v595_v13 = vmul.f32 %v6796_v28, %v6778_v39  ;;  %v7092_v58 = vld [vmem:[#allocation2 + $0x121] sm:$0xff]  ;;  %v7100_v12 = vld [vmem:[#allocation2 + $0x129] sm:$0xff] }
 0x315   : > { %705 = vst.msk [vmem:[#allocation2 + $0x51] sm:$0xff] %vm327_vm0, %v627_v27  ;;  %v596_v16 = vmul.f32 %v6796_v28, %v6782_v60  ;;  %706 = vst.msk [vmem:[#allocation2 + $0x61] sm:$0xff] %vm327_vm0, %v628_v26  ;;  %v591_v38 = vmul.f32 %v6796_v28, %v552_v29  ;;  %v592_v41 = vmul.f32 %v6796_v28, %v553_v32  ;;  %v7108_v20 = vld [vmem:[#allocation2 + $0x139] sm:$0xff]  ;;  %v7116_v21 = vld [vmem:[#allocation2 + $0x141] sm:$0xff] }
 0x316   : > { %707 = vst.msk [vmem:[#allocation2 + $0x69] sm:$0xff] %vm327_vm0, %v629_v30  ;;  %v636_v19 = vadd.f32 %v6830_v17, %v6823_v4  ;;  %v637_v22 = vadd.f32 %v6830_v17, %v6826_v8  ;;  %v593_v1 = vmul.f32 %v6796_v28, %v554_v33  ;;  %v594_v39 = vmul.f32 %v6796_v28, %v555_v36  ;;  %v3029_v4 = vld [vmem:[#allocation6 + $0x60] sm:$0xff]  ;;  %v7132_v29 = vld [vmem:[#allocation2 + $0x159] sm:$0xff] }
 0x317   : > { %v634_v60 = vadd.f32 %v6830_v17, %v595_v13  ;;  %v635_v42 = vadd.f32 %v6830_v17, %v596_v16  ;;  %v630_v45 = vadd.f32 %v6830_v17, %v591_v38  ;;  %v631_v47 = vadd.f32 %v6830_v17, %v592_v41  ;;  %7942 = vst [vmem:[#allocation19_spill] sm:$0xff] %v7041_v40  ;;  %v7124_v26 = vld [vmem:[#allocation2 + $0x151] sm:$0xff]  ;;  %v7140_v33 = vld [vmem:[#allocation2 + $0x169] sm:$0xff]  ;;  %v732_v13 = vld [vmem:[#allocation2] sm:$0xff] }
 0x318   : > { %714 = vst.msk [vmem:[#allocation2 + $0xc1] sm:$0xff] %vm327_vm0, %v636_v19  ;;  %715 = vst.msk [vmem:[#allocation2 + $0xc9] sm:$0xff] %vm327_vm0, %v637_v22  ;;  %v632_v8 = vadd.f32 %v6830_v17, %v593_v1  ;;  %v633_v50 = vadd.f32 %v6830_v17, %v594_v39  ;;  %v5469_v53 = vpack.c.bf16 %v3030_v48, %v3029_v4  ;;  %v7148_v16 = vld [vmem:[#allocation2 + $0x171] sm:$0xff]  ;;  %v1864_v19 = vld [vmem:[#allocation6 + $0x30] sm:$0xff] }
 0x319   : > { %712 = vst.msk [vmem:[#allocation2 + $0xa9] sm:$0xff] %vm327_vm0, %v634_v60  ;;  %713 = vst.msk [vmem:[#allocation2 + $0xb1] sm:$0xff] %vm327_vm0, %v635_v42  ;;  %v768_v28 = vld [vmem:[#allocation2 + $0x19] sm:$0xff]  ;;  %v769_v51 = vld [vmem:[#allocation2 + $0x21] sm:$0xff]  ;;  %v7049_v46 = vpack.c.bf16 %v3418_v37, %v3417_v34 }
 0x31a   : > { %708 = vst.msk [vmem:[#allocation2 + $0x79] sm:$0xff] %vm327_vm0, %v630_v45  ;;  %709 = vst.msk [vmem:[#allocation2 + $0x81] sm:$0xff] %vm327_vm0, %v631_v47  ;;  %4984 = vmatprep.mubr.msk.f32.mxu1 %vm327_vm0, %v768_v28  ;;  %5189 = vmatprep.mubr.msk.f32.mxu0 %vm327_vm0, %v768_v28  ;;  %v6956_v17 = vld [vmem:[#allocation2 + $0x31] sm:$0xff]  ;;  %v7043_v43 = vld [vmem:[#allocation2 + $0x1a] sm:$0xff] }
 0x31b   : > { %710 = vst.msk [vmem:[#allocation2 + $0x91] sm:$0xff] %vm327_vm0, %v632_v8  ;;  %711 = vst.msk [vmem:[#allocation2 + $0x99] sm:$0xff] %vm327_vm0, %v633_v50  ;;  %4985 = vmatmul.mubr.msk.f32.gmra.mrb[2].mxu1 %vm327_vm0, %v769_v51  ;;  %5190 = vmatmul.mubr.msk.f32.vlgmr.msra.gmra.mrb[0].mxu0 %vm327_vm0, %v769_v51  ;;  %v6963_v54 = vld [vmem:[#allocation2 + $0x39] sm:$0xff]  ;;  %v6969_v35 = vld [vmem:[#allocation2 + $0x49] sm:$0xff] }
 0x31c   : > { %5468 = vmatpush3.bf16.msra.mxu0 %v6768_v56  ;;  %4987 = vmatprep.mubr.msk.f32.mxu1 %vm327_vm0, %v6956_v17  ;;  %v6975_v56 = vld [vmem:[#allocation2 + $0x51] sm:$0xff]  ;;  %v6981_v57 = vld [vmem:[#allocation2 + $0x61] sm:$0xff]  ;;  %7943 = vst [vmem:[#allocation20_spill] sm:$0xff] %v7051_v62  ;;  %7944 = vst [vmem:[#allocation21_spill] sm:$0xff] %v7059_v23 }
 0x31d   : > { %5192 = vmatprep.mubr.msk.f32.mxu0 %vm327_vm0, %v6956_v17  ;;  %5470 = vmatprep.subr.bf16.mxu0 %v5469_v53  ;;  %v6987_v59 = vld [vmem:[#allocation2 + $0x69] sm:$0xff]  ;;  %v7063_v49 = vld [vmem:[#allocation2 + $0x32] sm:$0xff]  ;;  %7945 = vst [vmem:[#allocation22_spill] sm:$0xff] %v7068_v5  ;;  %v7070_v6 = vld [vmem:[#allocation2 + $0x3a] sm:$0xff] }
 0x31e   : > { %v7053_v63 = vld [vmem:[#allocation2 + $0x22] sm:$0xff]  ;;  %7946 = vst [vmem:[#allocation23_spill] sm:$0xff] %v7076_v52  ;;  %v7078_v0 = vld [vmem:[#allocation2 + $0x4a] sm:$0xff]  ;;  %7947 = vst [vmem:[#allocation24_spill] sm:$0xff] %v7084_v2 }
 0x31f   : > { %4988 = vmatmul.mubr.msk.f32.gmra.mrb[4].mxu1 %vm327_vm0, %v6963_v54  ;;  %5193 = vmatmul.mubr.msk.f32.gmra.mrb[2].mxu0 %vm327_vm0, %v6963_v54  ;;  %v7029_v7 = vld [vmem:[#allocation2 + $0xc1] sm:$0xff]  ;;  %v7035_v31 = vld [vmem:[#allocation2 + $0xc9] sm:$0xff]  ;;  %v7086_v55 = vld [vmem:[#allocation2 + $0x52] sm:$0xff]  ;;  %7948 = vst [vmem:[#allocation25_spill] sm:$0xff] %v7092_v58 }
 0x320   : > { %4990 = vmatprep.mubr.msk.f32.mxu1 %vm327_vm0, %v6969_v35  ;;  %5195 = vmatprep.mubr.msk.f32.mxu0 %vm327_vm0, %v6969_v35  ;;  %v7017_v18 = vld [vmem:[#allocation2 + $0xa9] sm:$0xff]  ;;  %v7023_v25 = vld [vmem:[#allocation2 + $0xb1] sm:$0xff]  ;;  %7940 = vst [vmem:[#allocation17_spill] sm:$0xff] %v7029_v7  ;;  %7941 = vst [vmem:[#allocation18_spill] sm:$0xff] %v7035_v31 }
 0x321   : > { %v6993_v9 = vld [vmem:[#allocation2 + $0x79] sm:$0xff]  ;;  %v6999_v3 = vld [vmem:[#allocation2 + $0x81] sm:$0xff]  ;;  %7949 = vst [vmem:[#allocation26_spill] sm:$0xff] %v7100_v12  ;;  %v7102_v24 = vld [vmem:[#allocation2 + $0x6a] sm:$0xff] }
 0x322   : > { %v7005_v14 = vld [vmem:[#allocation2 + $0x91] sm:$0xff]  ;;  %v7011_v15 = vld [vmem:[#allocation2 + $0x99] sm:$0xff]  ;;  %v7094_v61 = vld [vmem:[#allocation2 + $0x62] sm:$0xff]  ;;  %7950 = vst [vmem:[#allocation27_spill] sm:$0xff] %v7108_v20 }
 0x323   : > { %4991 = vmatmul.mubr.msk.f32.gmra.mrb[6].mxu1 %vm327_vm0, %v6975_v56  ;;  %5196 = vmatmul.mubr.msk.f32.gmra.mrb[4].mxu0 %vm327_vm0, %v6975_v56  ;;  %v7110_v10 = vld [vmem:[#allocation2 + $0x7a] sm:$0xff]  ;;  %7951 = vst [vmem:[#allocation28_spill] sm:$0xff] %v7116_v21  ;;  %v7118_v27 = vld [vmem:[#allocation2 + $0x82] sm:$0xff]  ;;  %7952 = vst [vmem:[#allocation29_spill] sm:$0xff] %v7124_v26 }
 0x324   : > { %4993 = vmatprep.mubr.msk.f32.mxu1 %vm327_vm0, %v6981_v57  ;;  %5198 = vmatprep.mubr.msk.f32.mxu0 %vm327_vm0, %v6981_v57  ;;  %v7126_v30 = vld [vmem:[#allocation2 + $0x92] sm:$0xff]  ;;  %7953 = vst [vmem:[#allocation30_spill] sm:$0xff] %v7132_v29  ;;  %v7134_v32 = vld [vmem:[#allocation2 + $0x9a] sm:$0xff]  ;;  %7954 = vst [vmem:[#allocation31_spill] sm:$0xff] %v7140_v33 }
 0x325   : > { %v7142_v36 = vld [vmem:[#allocation2 + $0xaa] sm:$0xff]  ;;  %7955 = vst [vmem:[#allocation32_spill] sm:$0xff] %v7148_v16  ;;  %v7150_v38 = vld [vmem:[#allocation2 + $0xb2] sm:$0xff]  ;;  %v7156_v41 = vld [vmem:[#allocation2 + $0xc2] sm:$0xff] }
 0x326   : > { %v1865_v22 = vld [vmem:[#allocation6 + $0x38] sm:$0xff]  ;;  %v7168_v42 = vld [vmem:[#allocation2 + $0x18] sm:$0xff]  ;;  %v7177_v47 = vld [vmem:[#allocation2 + $0x20] sm:$0xff] }
 0x327   : > { %4994 = vmatmul.mubr.msk.f32.gmra.mrb[8].mxu1 %vm327_vm0, %v6987_v59  ;;  %5199 = vmatmul.mubr.msk.f32.gmra.mrb[6].mxu0 %vm327_vm0, %v6987_v59  ;;  %v733_v1 = vld [vmem:[#allocation2 + $0x8] sm:$0xff]  ;;  %v7163_v60 = vpack.c.bf16 %v1865_v22, %v1864_v19  ;;  %7956 = vst [vmem:[#allocation33_spill] sm:$0xff] %v7168_v42  ;;  %v7170_v45 = vld [vmem:[#allocation2 + $0xda] sm:$0xff]  ;;  %7957 = vst [vmem:[#allocation34_spill] sm:$0xff] %v7177_v47 }
 0x328   : > { %4996 = vmatprep.mubr.msk.f32.mxu1 %vm327_vm0, %v6993_v9  ;;  %5201 = vmatprep.mubr.msk.f32.mxu0 %vm327_vm0, %v6993_v9  ;;  %v7161_v39 = vld [vmem:[#allocation2 + $0xca] sm:$0xff]  ;;  %v7179_v4 = vld [vmem:[#allocation2 + $0xe2] sm:$0xff]  ;;  %v7188_v8 = vld [vmem:[#allocation2 + $0xf2] sm:$0xff] }
 0x329   : > { %v7186_v48 = vld [vmem:[#allocation2 + $0x30] sm:$0xff]  ;;  %v7196_v50 = vld [vmem:[#allocation2 + $0xfa] sm:$0xff]  ;;  %v7202_v28 = vld [vmem:[#allocation2 + $0x48] sm:$0xff] }
 0x32a   : > { %7958 = vst [vmem:[#allocation35_spill] sm:$0xff] %v7202_v28  ;;  %v7204_v51 = vld [vmem:[#allocation2 + $0x10a] sm:$0xff]  ;;  %v7212_v34 = vld [vmem:[#allocation2 + $0x112] sm:$0xff]  ;;  %v7218_v37 = vld [vmem:[#allocation2 + $0x60] sm:$0xff] }
 0x32b   : > { %4997 = vmatmul.mubr.msk.f32.gmra.mrb[10].mxu1 %vm327_vm0, %v6999_v3  ;;  %5202 = vmatmul.mubr.msk.f32.gmra.mrb[8].mxu0 %vm327_vm0, %v6999_v3  ;;  %7960 = vst [vmem:[#allocation37_spill] sm:$0xff] %v7218_v37  ;;  %v7226_v19 = vld [vmem:[#allocation2 + $0x68] sm:$0xff] }
 0x32c   : > { %4999 = vmatprep.mubr.msk.f32.mxu1 %vm327_vm0, %v7005_v14  ;;  %5204 = vmatprep.mubr.msk.f32.mxu0 %vm327_vm0, %v7005_v14  ;;  %7961 = vst [vmem:[#allocation38_spill] sm:$0xff] %v7226_v19  ;;  %v7228_v22 = vld [vmem:[#allocation2 + $0x12a] sm:$0xff] }
 0x32f   : > { %5000 = vmatmul.mubr.msk.f32.gmra.mrb[12].mxu1 %vm327_vm0, %v7011_v15  ;;  %5205 = vmatmul.mubr.msk.f32.gmra.mrb[10].mxu0 %vm327_vm0, %v7011_v15 }
 0x330   : > { %5002 = vmatprep.mubr.msk.f32.mxu1 %vm327_vm0, %v7017_v18  ;;  %5207 = vmatprep.mubr.msk.f32.mxu0 %vm327_vm0, %v7017_v18 }
 0x333   : > { %5003 = vmatmul.mubr.msk.f32.gmra.mrb[14].mxu1 %vm327_vm0, %v7023_v25  ;;  %5208 = vmatmul.mubr.msk.f32.gmra.mrb[12].mxu0 %vm327_vm0, %v7023_v25 }
 0x334   : > { %5005 = vmatprep.mubr.msk.f32.mxu1 %vm327_vm0, %v7029_v7  ;;  %5210 = vmatprep.mubr.msk.f32.mxu0 %vm327_vm0, %v7029_v7  ;;  %v7306_v7 = vld [vmem:[#allocation2 + $0xe0] sm:$0xff] }
 0x337   : > { %5006 = vmatmul.mubr.msk.f32.gmra.mrb[16].mxu1 %vm327_vm0, %v7035_v31  ;;  %5211 = vmatmul.mubr.msk.f32.gmra.mrb[14].mxu0 %vm327_vm0, %v7035_v31  ;;  %v3806_v31 = vld [vmem:[#allocation6 + $0x88] sm:$0xff] }
 0x338   : > { %5008 = vmatprep.mubr.msk.f32.mxu1 %vm327_vm0, %v7041_v40  ;;  %5241 = vmatprep.mubr.msk.f32.mxu0 %vm327_vm0, %v7043_v43  ;;  %v7292_v40 = vld [vmem:[#allocation2 + $0x18a] sm:$0xff] }
 0x339   : > { %7970 = vst [vmem:[#allocation47_spill] sm:$0xff] %v7292_v40 }
 0x33b   : > { %5009 = vmatmul.mubr.msk.f32.gmra.mrb[18].mxu1 %vm327_vm0, %v7051_v62  ;;  %5242 = vmatmul.mubr.msk.f32.vlgmr.msra.gmra.mrb[0].mxu0 %vm327_vm0, %v7053_v63  ;;  %v7284_v62 = vld [vmem:[#allocation2 + $0x182] sm:$0xff] }
 0x33c   : > { %5472 = vmatpush3.bf16.msra.mxu0 %v5469_v53  ;;  %5011 = vmatprep.mubr.msk.f32.mxu1 %vm327_vm0, %v7059_v23  ;;  %v7210_v53 = vld [vmem:[#allocation2 + $0x50] sm:$0xff]  ;;  %v7282_v23 = vld [vmem:[#allocation2 + $0xc0] sm:$0xff]  ;;  %7969 = vst [vmem:[#allocation46_spill] sm:$0xff] %v7284_v62 }
 0x33d   : > { %5244 = vmatprep.mubr.msk.f32.mxu0 %vm327_vm0, %v7063_v49  ;;  %5474 = vmatprep.subr.bf16.mxu0 %v7049_v46  ;;  %7959 = vst [vmem:[#allocation36_spill] sm:$0xff] %v7210_v53 }
 0x33f   : > { %5012 = vmatmul.mubr.msk.f32.gmra.mrb[20].mxu1 %vm327_vm0, %v7068_v5  ;;  %5245 = vmatmul.mubr.msk.f32.gmra.mrb[2].mxu0 %vm327_vm0, %v7070_v6  ;;  %v7276_v5 = vld [vmem:[#allocation2 + $0x172] sm:$0xff] }
 0x340   : > { %5014 = vmatprep.mubr.msk.f32.mxu1 %vm327_vm0, %v7076_v52  ;;  %5247 = vmatprep.mubr.msk.f32.mxu0 %vm327_vm0, %v7078_v0  ;;  %v7274_v52 = vld [vmem:[#allocation2 + $0xb0] sm:$0xff]  ;;  %7968 = vst [vmem:[#allocation45_spill] sm:$0xff] %v7276_v5 }
 0x341   : > { %7967 = vst [vmem:[#allocation44_spill] sm:$0xff] %v7274_v52 }
 0x343   : > { %5015 = vmatmul.mubr.msk.f32.gmra.mrb[22].mxu1 %vm327_vm0, %v7084_v2  ;;  %5248 = vmatmul.mubr.msk.f32.gmra.mrb[4].mxu0 %vm327_vm0, %v7086_v55  ;;  %v7268_v2 = vld [vmem:[#allocation2 + $0x16a] sm:$0xff] }
 0x344   : > { %5017 = vmatprep.mubr.msk.f32.mxu1 %vm327_vm0, %v7092_v58  ;;  %5250 = vmatprep.mubr.msk.f32.mxu0 %vm327_vm0, %v7094_v61  ;;  %v7266_v58 = vld [vmem:[#allocation2 + $0xa8] sm:$0xff]  ;;  %7966 = vst [vmem:[#allocation43_spill] sm:$0xff] %v7268_v2 }
 0x347   : > { %5018 = vmatmul.mubr.msk.f32.gmra.mrb[24].mxu1 %vm327_vm0, %v7100_v12  ;;  %5251 = vmatmul.mubr.msk.f32.gmra.mrb[6].mxu0 %vm327_vm0, %v7102_v24  ;;  %v7260_v12 = vld [vmem:[#allocation2 + $0x15a] sm:$0xff] }
 0x348   : > { %5020 = vmatprep.mubr.msk.f32.mxu1 %vm327_vm0, %v7108_v20  ;;  %5253 = vmatprep.mubr.msk.f32.mxu0 %vm327_vm0, %v7110_v10  ;;  %v7258_v20 = vld [vmem:[#allocation2 + $0x98] sm:$0xff] }
 0x349   : > { %7965 = vst [vmem:[#allocation42_spill] sm:$0xff] %v7258_v20 }
 0x34b   : > { %5021 = vmatmul.mubr.msk.f32.gmra.mrb[26].mxu1 %vm327_vm0, %v7116_v21  ;;  %5254 = vmatmul.mubr.msk.f32.gmra.mrb[8].mxu0 %vm327_vm0, %v7118_v27  ;;  %v7252_v21 = vld [vmem:[#allocation2 + $0x152] sm:$0xff] }
 0x34c   : > { %5023 = vmatprep.mubr.msk.f32.mxu1 %vm327_vm0, %v7124_v26  ;;  %5256 = vmatprep.mubr.msk.f32.mxu0 %vm327_vm0, %v7126_v30  ;;  %v7250_v26 = vld [vmem:[#allocation2 + $0x90] sm:$0xff] }
 0x34d   : > { %7964 = vst [vmem:[#allocation41_spill] sm:$0xff] %v7250_v26 }
 0x34f   : > { %5024 = vmatmul.mubr.msk.f32.gmra.mrb[28].mxu1 %vm327_vm0, %v7132_v29  ;;  %5257 = vmatmul.mubr.msk.f32.gmra.mrb[10].mxu0 %vm327_vm0, %v7134_v32  ;;  %v7244_v29 = vld [vmem:[#allocation2 + $0x142] sm:$0xff] }
 0x350   : > { %5026 = vmatprep.mubr.msk.f32.mxu1 %vm327_vm0, %v7140_v33  ;;  %5259 = vmatprep.mubr.msk.f32.mxu0 %vm327_vm0, %v7142_v36  ;;  %v7242_v33 = vld [vmem:[#allocation2 + $0x80] sm:$0xff] }
 0x351   : > { %7963 = vst [vmem:[#allocation40_spill] sm:$0xff] %v7242_v33 }
 0x353   : > { %5027 = vmatmul.mubr.msk.f32.gmra.mrb[30].mxu1 %vm327_vm0, %v7148_v16  ;;  %5260 = vmatmul.mubr.msk.f32.gmra.mrb[12].mxu0 %vm327_vm0, %v7150_v38  ;;  %v7236_v16 = vld [vmem:[#allocation2 + $0x13a] sm:$0xff] }
 0x354   : > { %5262 = vmatprep.mubr.msk.f32.mxu0 %vm327_vm0, %v7156_v41  ;;  %5033 = vmatprep.mubr.msk.f32.mxu1 %vm327_vm0, %v732_v13  ;;  %v7220_v13 = vld [vmem:[#allocation2 + $0x122] sm:$0xff] }
 0x357   : > { %5034 = vmatmul.mubr.msk.f32.vlgmr.msra.gmra.mrb[0].mxu1 %vm327_vm0, %v733_v1  ;;  %5263 = vmatmul.mubr.msk.f32.gmra.mrb[14].mxu0 %vm327_vm0, %v7161_v39  ;;  %v7234_v1 = vld [vmem:[#allocation2 + $0x78] sm:$0xff] }
 0x358   : > { %5036 = vmatprep.mubr.msk.f32.mxu1 %vm327_vm0, %v7168_v42  ;;  %5265 = vmatprep.mubr.msk.f32.mxu0 %vm327_vm0, %v7170_v45  ;;  %7962 = vst [vmem:[#allocation39_spill] sm:$0xff] %v7234_v1  ;;  %v3805_v42 = vld [vmem:[#allocation6 + $0x80] sm:$0xff] }
 0x359   : > { %5456 = vmatpush3.bf16.msra.mxu1 %v6771_v11  ;;  %v7194_v11 = vld [vmem:[#allocation2 + $0x38] sm:$0xff] }
 0x35a   : > { %5458 = vmatprep.subr.bf16.mxu1 %v7163_v60 }
 0x35b   : > { %5037 = vmatmul.mubr.msk.f32.gmra.mrb[2].mxu1 %vm327_vm0, %v7177_v47  ;;  %5266 = vmatmul.mubr.msk.f32.gmra.mrb[16].mxu0 %vm327_vm0, %v7179_v4  ;;  %v7290_v47 = vld [vmem:[#allocation2 + $0xc8] sm:$0xff] }
 0x35c   : > { %5039 = vmatprep.mubr.msk.f32.mxu1 %vm327_vm0, %v7186_v48  ;;  %5268 = vmatprep.mubr.msk.f32.mxu0 %vm327_vm0, %v7188_v8 }
 0x35f   : > { %5040 = vmatmul.mubr.msk.f32.gmra.mrb[4].mxu1 %vm327_vm0, %v7194_v11  ;;  %5269 = vmatmul.mubr.msk.f32.gmra.mrb[18].mxu0 %vm327_vm0, %v7196_v50 }
 0x360   : > { %5042 = vmatprep.mubr.msk.f32.mxu1 %vm327_vm0, %v7202_v28  ;;  %5271 = vmatprep.mubr.msk.f32.mxu0 %vm327_vm0, %v7204_v51 }
 0x363   : > { %5043 = vmatmul.mubr.msk.f32.gmra.mrb[6].mxu1 %vm327_vm0, %v7210_v53  ;;  %5272 = vmatmul.mubr.msk.f32.gmra.mrb[20].mxu0 %vm327_vm0, %v7212_v34 }
 0x364   : > { %5045 = vmatprep.mubr.msk.f32.mxu1 %vm327_vm0, %v7218_v37  ;;  %5274 = vmatprep.mubr.msk.f32.mxu0 %vm327_vm0, %v7220_v13 }
 0x367   : > { %5046 = vmatmul.mubr.msk.f32.gmra.mrb[8].mxu1 %vm327_vm0, %v7226_v19  ;;  %5275 = vmatmul.mubr.msk.f32.gmra.mrb[22].mxu0 %vm327_vm0, %v7228_v22 }
 0x368   : > { %5048 = vmatprep.mubr.msk.f32.mxu1 %vm327_vm0, %v7234_v1  ;;  %5277 = vmatprep.mubr.msk.f32.mxu0 %vm327_vm0, %v7236_v16 }
 0x36b   : > { %5049 = vmatmul.mubr.msk.f32.gmra.mrb[10].mxu1 %vm327_vm0, %v7242_v33  ;;  %5278 = vmatmul.mubr.msk.f32.gmra.mrb[24].mxu0 %vm327_vm0, %v7244_v29 }
 0x36c   : > { %5051 = vmatprep.mubr.msk.f32.mxu1 %vm327_vm0, %v7250_v26  ;;  %5280 = vmatprep.mubr.msk.f32.mxu0 %vm327_vm0, %v7252_v21 }
 0x36f   : > { %5052 = vmatmul.mubr.msk.f32.gmra.mrb[12].mxu1 %vm327_vm0, %v7258_v20  ;;  %5281 = vmatmul.mubr.msk.f32.gmra.mrb[26].mxu0 %vm327_vm0, %v7260_v12 }
 0x370   : > { %5054 = vmatprep.mubr.msk.f32.mxu1 %vm327_vm0, %v7266_v58  ;;  %5283 = vmatprep.mubr.msk.f32.mxu0 %vm327_vm0, %v7268_v2  ;;  %v7312_v2 = vld [vmem:[#allocation2 + $0xf0] sm:$0xff] }
 0x373   : > { %5055 = vmatmul.mubr.msk.f32.gmra.mrb[14].mxu1 %vm327_vm0, %v7274_v52  ;;  %5284 = vmatmul.mubr.msk.f32.gmra.mrb[28].mxu0 %vm327_vm0, %v7276_v5  ;;  %v7298_v5 = vld [vmem:[#allocation2 + $0xd8] sm:$0xff] }
 0x374   : > { %5057 = vmatprep.mubr.msk.f32.mxu1 %vm327_vm0, %v7282_v23  ;;  %5286 = vmatprep.mubr.msk.f32.mxu0 %vm327_vm0, %v7284_v62  ;;  %v7304_v62 = vpack.c.bf16 %v3806_v31, %v3805_v42  ;;  %v7320_v31 = vld [vmem:[#allocation2 + $0xf8] sm:$0xff]  ;;  %v7326_v42 = vld [vmem:[#allocation2 + $0x108] sm:$0xff] }
 0x377   : > { %5058 = vmatmul.mubr.msk.f32.gmra.mrb[16].mxu1 %vm327_vm0, %v7290_v47  ;;  %5287 = vmatmul.mubr.msk.f32.gmra.mrb[30].mxu0 %vm327_vm0, %v7292_v40  ;;  %v7338_v40 = vld [vmem:[#allocation2 + $0x120] sm:$0xff] }
 0x378   : > { %5060 = vmatprep.mubr.msk.f32.mxu1 %vm327_vm0, %v7298_v5  ;;  %5293 = vmatprep.mubr.msk.f32.mxu0 %vm327_vm0, %v7186_v48 }
 0x37b   : > { %5061 = vmatmul.mubr.msk.f32.gmra.mrb[18].mxu1 %vm327_vm0, %v7306_v7  ;;  %5294 = vmatmul.mubr.msk.f32.vlgmr.msra.gmra.mrb[0].mxu0 %vm327_vm0, %v7194_v11 }
 0x37c   : > { %5476 = vmatpush3.bf16.msra.mxu0 %v7049_v46  ;;  %5063 = vmatprep.mubr.msk.f32.mxu1 %vm327_vm0, %v7312_v2  ;;  %v7332_v46 = vld [vmem:[#allocation2 + $0x110] sm:$0xff] }
 0x37d   : > { %5296 = vmatprep.mubr.msk.f32.mxu0 %vm327_vm0, %v7202_v28  ;;  %5478 = vmatprep.subr.bf16.mxu0 %v7304_v62  ;;  %v7380_v28 = vld [vmem:[#allocation2 + $0x170] sm:$0xff] }
 0x37f   : > { %5064 = vmatmul.mubr.msk.f32.gmra.mrb[20].mxu1 %vm327_vm0, %v7320_v31  ;;  %5297 = vmatmul.mubr.msk.f32.gmra.mrb[2].mxu0 %vm327_vm0, %v7210_v53  ;;  %v7344_v53 = vld [vmem:[#allocation2 + $0x128] sm:$0xff] }
 0x380   : > { %5066 = vmatprep.mubr.msk.f32.mxu1 %vm327_vm0, %v7326_v42  ;;  %5299 = vmatprep.mubr.msk.f32.mxu0 %vm327_vm0, %v7218_v37  ;;  %v7350_v37 = vld [vmem:[#allocation2 + $0x138] sm:$0xff] }
 0x383   : > { %5067 = vmatmul.mubr.msk.f32.gmra.mrb[22].mxu1 %vm327_vm0, %v7332_v46  ;;  %5300 = vmatmul.mubr.msk.f32.gmra.mrb[4].mxu0 %vm327_vm0, %v7226_v19  ;;  %v7356_v19 = vld [vmem:[#allocation2 + $0x140] sm:$0xff] }
 0x384   : > { %5069 = vmatprep.mubr.msk.f32.mxu1 %vm327_vm0, %v7338_v40  ;;  %5302 = vmatprep.mubr.msk.f32.mxu0 %vm327_vm0, %v7234_v1  ;;  %v7362_v1 = vld [vmem:[#allocation2 + $0x150] sm:$0xff] }
 0x387   : > { %5070 = vmatmul.mubr.msk.f32.gmra.mrb[24].mxu1 %vm327_vm0, %v7344_v53  ;;  %5303 = vmatmul.mubr.msk.f32.gmra.mrb[6].mxu0 %vm327_vm0, %v7242_v33  ;;  %v7368_v33 = vld [vmem:[#allocation2 + $0x158] sm:$0xff] }
 0x388   : > { %5072 = vmatprep.mubr.msk.f32.mxu1 %vm327_vm0, %v7350_v37  ;;  %5305 = vmatprep.mubr.msk.f32.mxu0 %vm327_vm0, %v7250_v26  ;;  %v7374_v26 = vld [vmem:[#allocation2 + $0x168] sm:$0xff] }
 0x38b   : > { %5073 = vmatmul.mubr.msk.f32.gmra.mrb[26].mxu1 %vm327_vm0, %v7356_v19  ;;  %5306 = vmatmul.mubr.msk.f32.gmra.mrb[8].mxu0 %vm327_vm0, %v7258_v20  ;;  %v1443_v20 = vld [vmem:[#allocation2 + $0x2] sm:$0xff] }
 0x38c   : > { %5075 = vmatprep.mubr.msk.f32.mxu1 %vm327_vm0, %v7362_v1  ;;  %5308 = vmatprep.mubr.msk.f32.mxu0 %vm327_vm0, %v7266_v58 }
 0x38f   : > { %5076 = vmatmul.mubr.msk.f32.gmra.mrb[28].mxu1 %vm327_vm0, %v7368_v33  ;;  %5309 = vmatmul.mubr.msk.f32.gmra.mrb[10].mxu0 %vm327_vm0, %v7274_v52  ;;  %v1444_v52 = vld [vmem:[#allocation2 + $0xa] sm:$0xff] }
 0x390   : > { %5078 = vmatprep.mubr.msk.f32.mxu1 %vm327_vm0, %v7374_v26  ;;  %5311 = vmatprep.mubr.msk.f32.mxu0 %vm327_vm0, %v7282_v23 }
 0x393   : > { %5079 = vmatmul.mubr.msk.f32.gmra.mrb[30].mxu1 %vm327_vm0, %v7380_v28  ;;  %5312 = vmatmul.mubr.msk.f32.gmra.mrb[12].mxu0 %vm327_vm0, %v7290_v47 }
 0x394   : > { %5314 = vmatprep.mubr.msk.f32.mxu0 %vm327_vm0, %v7298_v5  ;;  %5085 = vmatprep.mubr.msk.f32.mxu1 %vm327_vm0, %v1443_v20  ;;  %v3027_v20 = vld [vmem:[#allocation2 + $0x1a0] sm:$0xff] }
 0x397   : > { %5086 = vmatmul.mubr.msk.f32.vlgmr.msra.gmra.mrb[0].mxu1 %vm327_vm0, %v1444_v52  ;;  %5315 = vmatmul.mubr.msk.f32.gmra.mrb[14].mxu0 %vm327_vm0, %v7306_v7  ;;  %v7448_v52 = vld [vmem:[#allocation2 + $0x188] sm:$0xff] }
 0x398   : > { %5088 = vmatprep.mubr.msk.f32.mxu1 %vm327_vm0, %v7043_v43  ;;  %5317 = vmatprep.mubr.msk.f32.mxu0 %vm327_vm0, %v7312_v2  ;;  %v7442_v43 = vld [vmem:[#allocation2 + $0x180] sm:$0xff] }
 0x399   : > { %5460 = vmatpush3.bf16.msra.mxu1 %v7163_v60  ;;  %v7984_v60 = vld [vmem:[#allocation24_spill] sm:$0xff] }
 0x39a   : > { %5481 = vmatprep.subr.bf16.mxu1 %v6762_v44 }
 0x39b   : > { %5089 = vmatmul.mubr.msk.f32.gmra.mrb[2].mxu1 %vm327_vm0, %v7053_v63  ;;  %5318 = vmatmul.mubr.msk.f32.gmra.mrb[16].mxu0 %vm327_vm0, %v7320_v31  ;;  %v3026_v63 = vld [vmem:[#allocation2 + $0x198] sm:$0xff] }
 0x39c   : > { %5091 = vmatprep.mubr.msk.f32.mxu1 %vm327_vm0, %v7063_v49  ;;  %5320 = vmatprep.mubr.msk.f32.mxu0 %vm327_vm0, %v7326_v42 }
 0x39f   : > { %5092 = vmatmul.mubr.msk.f32.gmra.mrb[4].mxu1 %vm327_vm0, %v7070_v6  ;;  %5321 = vmatmul.mubr.msk.f32.gmra.mrb[18].mxu0 %vm327_vm0, %v7332_v46 }
 0x3a0   : > { %5094 = vmatprep.mubr.msk.f32.mxu1 %vm327_vm0, %v7078_v0  ;;  %5323 = vmatprep.mubr.msk.f32.mxu0 %vm327_vm0, %v7338_v40 }
 0x3a3   : > { %5095 = vmatmul.mubr.msk.f32.gmra.mrb[6].mxu1 %vm327_vm0, %v7086_v55  ;;  %5324 = vmatmul.mubr.msk.f32.gmra.mrb[20].mxu0 %vm327_vm0, %v7344_v53 }
 0x3a4   : > { %5097 = vmatprep.mubr.msk.f32.mxu1 %vm327_vm0, %v7094_v61  ;;  %5326 = vmatprep.mubr.msk.f32.mxu0 %vm327_vm0, %v7350_v37 }
 0x3a7   : > { %5098 = vmatmul.mubr.msk.f32.gmra.mrb[8].mxu1 %vm327_vm0, %v7102_v24  ;;  %5327 = vmatmul.mubr.msk.f32.gmra.mrb[22].mxu0 %vm327_vm0, %v7356_v19 }
 0x3a8   : > { %5100 = vmatprep.mubr.msk.f32.mxu1 %vm327_vm0, %v7110_v10  ;;  %5329 = vmatprep.mubr.msk.f32.mxu0 %vm327_vm0, %v7362_v1 }
 0x3ab   : > { %5101 = vmatmul.mubr.msk.f32.gmra.mrb[10].mxu1 %vm327_vm0, %v7118_v27  ;;  %5330 = vmatmul.mubr.msk.f32.gmra.mrb[24].mxu0 %vm327_vm0, %v7368_v33 }
 0x3ac   : > { %5103 = vmatprep.mubr.msk.f32.mxu1 %vm327_vm0, %v7126_v30  ;;  %5332 = vmatprep.mubr.msk.f32.mxu0 %vm327_vm0, %v7374_v26 }
 0x3af   : > { %5104 = vmatmul.mubr.msk.f32.gmra.mrb[12].mxu1 %vm327_vm0, %v7134_v32  ;;  %5333 = vmatmul.mubr.msk.f32.gmra.mrb[26].mxu0 %vm327_vm0, %v7380_v28 }
 0x3b0   : > { %5106 = vmatprep.mubr.msk.f32.mxu1 %vm327_vm0, %v7142_v36  ;;  %5335 = vmatprep.mubr.msk.f32.mxu0 %vm327_vm0, %v7442_v43 }
 0x3b3   : > { %5107 = vmatmul.mubr.msk.f32.gmra.mrb[14].mxu1 %vm327_vm0, %v7150_v38  ;;  %5336 = vmatmul.mubr.msk.f32.gmra.mrb[28].mxu0 %vm327_vm0, %v7448_v52 }
 0x3b4   : > { %5109 = vmatprep.mubr.msk.f32.mxu1 %vm327_vm0, %v7156_v41  ;;  %5338 = vmatprep.mubr.msk.f32.mxu0 %vm327_vm0, %v3026_v63  ;;  %v7988_v63 = vld [vmem:[#allocation26_spill] sm:$0xff] }
 0x3b7   : > { %5110 = vmatmul.mubr.msk.f32.gmra.mrb[16].mxu1 %vm327_vm0, %v7161_v39  ;;  %5339 = vmatmul.mubr.msk.f32.gmra.mrb[30].mxu0 %vm327_vm0, %v3027_v20  ;;  %v7989_v20 = vld [vmem:[#allocation39_spill] sm:$0xff] }
 0x3b8   : > { %5112 = vmatprep.mubr.msk.f32.mxu1 %vm327_vm0, %v7170_v45  ;;  %5345 = vmatprep.mubr.msk.f32.mxu0 %vm327_vm0, %v6956_v17  ;;  %v7971_v17 = vld [vmem:[#allocation43_spill] sm:$0xff] }
 0x3bb   : > { %5113 = vmatmul.mubr.msk.f32.gmra.mrb[18].mxu1 %vm327_vm0, %v7179_v4  ;;  %5346 = vmatmul.mubr.msk.f32.vlgmr.msra.gmra.mrb[0].mxu0 %vm327_vm0, %v6963_v54  ;;  %v7972_v54 = vld [vmem:[#allocation17_spill] sm:$0xff] }
 0x3bc   : > { %5480 = vmatpush3.bf16.msra.mxu0 %v7304_v62  ;;  %5115 = vmatprep.mubr.msk.f32.mxu1 %vm327_vm0, %v7188_v8  ;;  %v7983_v62 = vld [vmem:[#allocation36_spill] sm:$0xff] }
 0x3bd   : > { %5348 = vmatprep.mubr.msk.f32.mxu0 %vm327_vm0, %v6969_v35  ;;  %v7973_v35 = vld [vmem:[#allocation45_spill] sm:$0xff] }
 0x3bf   : > { %5116 = vmatmul.mubr.msk.f32.gmra.mrb[20].mxu1 %vm327_vm0, %v7196_v50  ;;  %5349 = vmatmul.mubr.msk.f32.gmra.mrb[2].mxu0 %vm327_vm0, %v6975_v56  ;;  %v7974_v56 = vld [vmem:[#allocation18_spill] sm:$0xff] }
 0x3c0   : > { %5118 = vmatprep.mubr.msk.f32.mxu1 %vm327_vm0, %v7204_v51  ;;  %5351 = vmatprep.mubr.msk.f32.mxu0 %vm327_vm0, %v6981_v57  ;;  %v7975_v57 = vld [vmem:[#allocation33_spill] sm:$0xff] }
 0x3c3   : > { %5119 = vmatmul.mubr.msk.f32.gmra.mrb[22].mxu1 %vm327_vm0, %v7212_v34  ;;  %5352 = vmatmul.mubr.msk.f32.gmra.mrb[4].mxu0 %vm327_vm0, %v6987_v59  ;;  %v7976_v59 = vld [vmem:[#allocation19_spill] sm:$0xff] }
 0x3c4   : > { %5121 = vmatprep.mubr.msk.f32.mxu1 %vm327_vm0, %v7220_v13  ;;  %5354 = vmatprep.mubr.msk.f32.mxu0 %vm327_vm0, %v6993_v9  ;;  %v7977_v9 = vld [vmem:[#allocation34_spill] sm:$0xff] }
 0x3c7   : > { %5122 = vmatmul.mubr.msk.f32.gmra.mrb[24].mxu1 %vm327_vm0, %v7228_v22  ;;  %5355 = vmatmul.mubr.msk.f32.gmra.mrb[6].mxu0 %vm327_vm0, %v6999_v3  ;;  %v7978_v3 = vld [vmem:[#allocation20_spill] sm:$0xff] }
 0x3c8   : > { %5124 = vmatprep.mubr.msk.f32.mxu1 %vm327_vm0, %v7236_v16  ;;  %5357 = vmatprep.mubr.msk.f32.mxu0 %vm327_vm0, %v7005_v14  ;;  %v7979_v14 = vld [vmem:[#allocation21_spill] sm:$0xff] }
 0x3cb   : > { %5125 = vmatmul.mubr.msk.f32.gmra.mrb[26].mxu1 %vm327_vm0, %v7244_v29  ;;  %5358 = vmatmul.mubr.msk.f32.gmra.mrb[8].mxu0 %vm327_vm0, %v7011_v15  ;;  %v7980_v15 = vld [vmem:[#allocation22_spill] sm:$0xff] }
 0x3cc   : > { %5127 = vmatprep.mubr.msk.f32.mxu1 %vm327_vm0, %v7252_v21  ;;  %5360 = vmatprep.mubr.msk.f32.mxu0 %vm327_vm0, %v7017_v18  ;;  %v7981_v18 = vld [vmem:[#allocation35_spill] sm:$0xff] }
 0x3cf   : > { %5128 = vmatmul.mubr.msk.f32.gmra.mrb[28].mxu1 %vm327_vm0, %v7260_v12  ;;  %5361 = vmatmul.mubr.msk.f32.gmra.mrb[10].mxu0 %vm327_vm0, %v7023_v25  ;;  %v7982_v25 = vld [vmem:[#allocation23_spill] sm:$0xff] }
 0x3d0   : > { %5130 = vmatprep.mubr.msk.f32.mxu1 %vm327_vm0, %v7971_v17  ;;  %5363 = vmatprep.mubr.msk.f32.mxu0 %vm327_vm0, %v7972_v54  ;;  %v7990_v54 = vld [vmem:[#allocation27_spill] sm:$0xff] }
 0x3d3   : > { %5131 = vmatmul.mubr.msk.f32.gmra.mrb[30].mxu1 %vm327_vm0, %v7973_v35  ;;  %5364 = vmatmul.mubr.msk.f32.gmra.mrb[12].mxu0 %vm327_vm0, %v7974_v56  ;;  %v7991_v56 = vld [vmem:[#allocation40_spill] sm:$0xff]  ;;  %v7580_v35 = vld [vmem:[#allocation2 + $0x189] sm:$0xff] }
 0x3d4   : > { %5137 = vmatprep.mubr.msk.f32.mxu1 %vm327_vm0, %v7975_v57  ;;  %5366 = vmatprep.mubr.msk.f32.mxu0 %vm327_vm0, %v7976_v59  ;;  %v7992_v57 = vld [vmem:[#allocation28_spill] sm:$0xff] }
 0x3d7   : > { %5138 = vmatmul.mubr.msk.f32.vlgmr.msra.gmra.mrb[0].mxu1 %vm327_vm0, %v7977_v9  ;;  %5367 = vmatmul.mubr.msk.f32.gmra.mrb[14].mxu0 %vm327_vm0, %v7978_v3  ;;  %v7993_v9 = vld [vmem:[#allocation41_spill] sm:$0xff] }
 0x3d8   : > { %5140 = vmatprep.mubr.msk.f32.mxu1 %vm327_vm0, %v7186_v48  ;;  %5369 = vmatprep.mubr.msk.f32.mxu0 %vm327_vm0, %v7979_v14  ;;  %v7985_v48 = vld [vmem:[#allocation37_spill] sm:$0xff] }
 0x3d9   : > { %5482 = vmatpush3.bf16.msra.mxu1 %v6762_v44  ;;  %v7986_v44 = vld [vmem:[#allocation25_spill] sm:$0xff] }
 0x3db   : > { %5141 = vmatmul.mubr.msk.f32.gmra.mrb[2].mxu1 %vm327_vm0, %v7194_v11  ;;  %5370 = vmatmul.mubr.msk.f32.gmra.mrb[16].mxu0 %vm327_vm0, %v7980_v15  ;;  %v7987_v11 = vld [vmem:[#allocation38_spill] sm:$0xff] }
 0x3dc   : > { %5143 = vmatprep.mubr.msk.f32.mxu1 %vm327_vm0, %v7981_v18  ;;  %5372 = vmatprep.mubr.msk.f32.mxu0 %vm327_vm0, %v7982_v25  ;;  %v7994_v18 = vld [vmem:[#allocation29_spill] sm:$0xff] }
 0x3df   : > { %5144 = vmatmul.mubr.msk.f32.gmra.mrb[4].mxu1 %vm327_vm0, %v7983_v62  ;;  %5373 = vmatmul.mubr.msk.f32.gmra.mrb[18].mxu0 %vm327_vm0, %v7984_v60  ;;  %v7995_v62 = vld [vmem:[#allocation42_spill] sm:$0xff] }
 0x3e0   : > { %5146 = vmatprep.mubr.msk.f32.mxu1 %vm327_vm0, %v7985_v48  ;;  %5375 = vmatprep.mubr.msk.f32.mxu0 %vm327_vm0, %v7986_v44  ;;  %v7996_v48 = vld [vmem:[#allocation30_spill] sm:$0xff] }
 0x3e3   : > { %5147 = vmatmul.mubr.msk.f32.gmra.mrb[6].mxu1 %vm327_vm0, %v7987_v11  ;;  %5376 = vmatmul.mubr.msk.f32.gmra.mrb[20].mxu0 %vm327_vm0, %v7988_v63  ;;  %v7997_v11 = vld [vmem:[#allocation31_spill] sm:$0xff] }
 0x3e4   : > { %5149 = vmatprep.mubr.msk.f32.mxu1 %vm327_vm0, %v7989_v20  ;;  %5378 = vmatprep.mubr.msk.f32.mxu0 %vm327_vm0, %v7990_v54  ;;  %v7998_v20 = vld [vmem:[#allocation44_spill] sm:$0xff] }
 0x3e7   : > { %5150 = vmatmul.mubr.msk.f32.gmra.mrb[8].mxu1 %vm327_vm0, %v7991_v56  ;;  %5379 = vmatmul.mubr.msk.f32.gmra.mrb[22].mxu0 %vm327_vm0, %v7992_v57  ;;  %v7999_v56 = vld [vmem:[#allocation32_spill] sm:$0xff] }
 0x3e8   : > { %5152 = vmatprep.mubr.msk.f32.mxu1 %vm327_vm0, %v7993_v9  ;;  %5381 = vmatprep.mubr.msk.f32.mxu0 %vm327_vm0, %v7994_v18  ;;  %v7574_v9 = vld [vmem:[#allocation2 + $0x181] sm:$0xff] }
 0x3eb   : > { %5153 = vmatmul.mubr.msk.f32.gmra.mrb[10].mxu1 %vm327_vm0, %v7995_v62  ;;  %5382 = vmatmul.mubr.msk.f32.gmra.mrb[24].mxu0 %vm327_vm0, %v7996_v48  ;;  %v3414_v62 = vld [vmem:[#allocation2 + $0x199] sm:$0xff] }
 0x3ec   : > { %5155 = vmatprep.mubr.msk.f32.mxu1 %vm327_vm0, %v7266_v58  ;;  %5384 = vmatprep.mubr.msk.f32.mxu0 %vm327_vm0, %v7997_v11  ;;  %v3415_v58 = vld [vmem:[#allocation2 + $0x1a1] sm:$0xff] }
 0x3ef   : > { %5156 = vmatmul.mubr.msk.f32.gmra.mrb[12].mxu1 %vm327_vm0, %v7998_v20  ;;  %5385 = vmatmul.mubr.msk.f32.gmra.mrb[26].mxu0 %vm327_vm0, %v7999_v56 }
 0x3f0   : > { %5158 = vmatprep.mubr.msk.f32.mxu1 %vm327_vm0, %v7282_v23  ;;  %5387 = vmatprep.mubr.msk.f32.mxu0 %vm327_vm0, %v7574_v9  ;;  %v3802_v23 = vld [vmem:[#allocation2 + $0x19a] sm:$0xff] }
 0x3f3   : > { %5159 = vmatmul.mubr.msk.f32.gmra.mrb[14].mxu1 %vm327_vm0, %v7290_v47  ;;  %5388 = vmatmul.mubr.msk.f32.gmra.mrb[28].mxu0 %vm327_vm0, %v7580_v35 }
 0x3f4   : > { %5161 = vmatprep.mubr.msk.f32.mxu1 %vm327_vm0, %v7298_v5  ;;  %5390 = vmatprep.mubr.msk.f32.mxu0 %vm327_vm0, %v3414_v62  ;;  %v3803_v5 = vld [vmem:[#allocation2 + $0x1a2] sm:$0xff] }
 0x3f7   : > { %5162 = vmatmul.mubr.msk.f32.gmra.mrb[16].mxu1 %vm327_vm0, %v7306_v7  ;;  %5391 = vmatmul.mubr.msk.f32.gmra.mrb[30].mxu0 %vm327_vm0, %v3415_v58  ;;  %v8000_v7 = vld [vmem:[#allocation45_spill] sm:$0xff] }
 0x3f8   : > { %5164 = vmatprep.mubr.msk.f32.mxu1 %vm327_vm0, %v7312_v2  ;;  %5397 = vmatprep.mubr.msk.f32.mxu0 %vm327_vm0, %v7063_v49  ;;  %v8002_v49 = vld [vmem:[#allocation47_spill] sm:$0xff] }
 0x3fb   : > { %5165 = vmatmul.mubr.msk.f32.gmra.mrb[18].mxu1 %vm327_vm0, %v7320_v31  ;;  %5398 = vmatmul.mubr.msk.f32.vlgmr.msra.gmra.mrb[0].mxu0 %vm327_vm0, %v7070_v6 }
 0x3fc   : > { %5167 = vmatprep.mubr.msk.f32.mxu1 %vm327_vm0, %v7326_v42  ;;  %5400 = vmatprep.mubr.msk.f32.mxu0 %vm327_vm0, %v7078_v0 }
 0x3ff   : > { %5168 = vmatmul.mubr.msk.f32.gmra.mrb[20].mxu1 %vm327_vm0, %v7332_v46  ;;  %5401 = vmatmul.mubr.msk.f32.gmra.mrb[2].mxu0 %vm327_vm0, %v7086_v55 }
 0x400   : > { %5170 = vmatprep.mubr.msk.f32.mxu1 %vm327_vm0, %v7338_v40  ;;  %5403 = vmatprep.mubr.msk.f32.mxu0 %vm327_vm0, %v7094_v61  ;;  %v8001_v40 = vld [vmem:[#allocation46_spill] sm:$0xff] }
 0x403   : > { %5171 = vmatmul.mubr.msk.f32.gmra.mrb[22].mxu1 %vm327_vm0, %v7344_v53  ;;  %5404 = vmatmul.mubr.msk.f32.gmra.mrb[4].mxu0 %vm327_vm0, %v7102_v24 }
 0x404   : > { %5173 = vmatprep.mubr.msk.f32.mxu1 %vm327_vm0, %v7350_v37  ;;  %5406 = vmatprep.mubr.msk.f32.mxu0 %vm327_vm0, %v7110_v10 }
 0x407   : > { %5174 = vmatmul.mubr.msk.f32.gmra.mrb[24].mxu1 %vm327_vm0, %v7356_v19  ;;  %5407 = vmatmul.mubr.msk.f32.gmra.mrb[6].mxu0 %vm327_vm0, %v7118_v27 }
 0x408   : > { %5176 = vmatprep.mubr.msk.f32.mxu1 %vm327_vm0, %v7362_v1  ;;  %5409 = vmatprep.mubr.msk.f32.mxu0 %vm327_vm0, %v7126_v30 }
 0x40b   : > { %5177 = vmatmul.mubr.msk.f32.gmra.mrb[26].mxu1 %vm327_vm0, %v7368_v33  ;;  %5410 = vmatmul.mubr.msk.f32.gmra.mrb[8].mxu0 %vm327_vm0, %v7134_v32 }
 0x40c   : > { %5179 = vmatprep.mubr.msk.f32.mxu1 %vm327_vm0, %v7374_v26  ;;  %5412 = vmatprep.mubr.msk.f32.mxu0 %vm327_vm0, %v7142_v36 }
 0x40f   : > { %5180 = vmatmul.mubr.msk.f32.gmra.mrb[28].mxu1 %vm327_vm0, %v7380_v28  ;;  %5413 = vmatmul.mubr.msk.f32.gmra.mrb[10].mxu0 %vm327_vm0, %v7150_v38  ;;  %v7716_v38 = vld [vmem:[#allocation8] ss:$0 sm:$0xff] }
 0x410   : > { %5182 = vmatprep.mubr.msk.f32.mxu1 %vm327_vm0, %v7442_v43  ;;  %5415 = vmatprep.mubr.msk.f32.mxu0 %vm327_vm0, %v7156_v41 }
 0x413   : > { %5183 = vmatmul.mubr.msk.f32.gmra.mrb[30].mxu1 %vm327_vm0, %v7448_v52  ;;  %5416 = vmatmul.mubr.msk.f32.gmra.mrb[12].mxu0 %vm327_vm0, %v7161_v39 }
 0x414   : > { %5213 = vmatprep.mubr.msk.f32.mxu1 %vm327_vm0, %v7976_v59  ;;  %5418 = vmatprep.mubr.msk.f32.mxu0 %vm327_vm0, %v7170_v45 }
 0x417   : > { %5214 = vmatmul.mubr.msk.f32.vlgmr.msra.gmra.mrb[16].mxu1 %vm327_vm0, %v7978_v3  ;;  %5419 = vmatmul.mubr.msk.f32.gmra.mrb[14].mxu0 %vm327_vm0, %v7179_v4 }
 0x418   : > { %5216 = vmatprep.mubr.msk.f32.mxu1 %vm327_vm0, %v7979_v14  ;;  %5421 = vmatprep.mubr.msk.f32.mxu0 %vm327_vm0, %v7188_v8 }
 0x41b   : > { %5217 = vmatmul.mubr.msk.f32.gmra.mrb[18].mxu1 %vm327_vm0, %v7980_v15  ;;  %5422 = vmatmul.mubr.msk.f32.gmra.mrb[16].mxu0 %vm327_vm0, %v7196_v50 }
 0x41c   : > { %5219 = vmatprep.mubr.msk.f32.mxu1 %vm327_vm0, %v7982_v25  ;;  %5424 = vmatprep.mubr.msk.f32.mxu0 %vm327_vm0, %v7204_v51 }
 0x41f   : > { %5220 = vmatmul.mubr.msk.f32.gmra.mrb[20].mxu1 %vm327_vm0, %v7984_v60  ;;  %5425 = vmatmul.mubr.msk.f32.gmra.mrb[18].mxu0 %vm327_vm0, %v7212_v34 }
 0x420   : > { %5222 = vmatprep.mubr.msk.f32.mxu1 %vm327_vm0, %v7986_v44  ;;  %5427 = vmatprep.mubr.msk.f32.mxu0 %vm327_vm0, %v7220_v13 }
 0x423   : > { %5223 = vmatmul.mubr.msk.f32.gmra.mrb[22].mxu1 %vm327_vm0, %v7988_v63  ;;  %5428 = vmatmul.mubr.msk.f32.gmra.mrb[20].mxu0 %vm327_vm0, %v7228_v22 }
 0x424   : > { %5225 = vmatprep.mubr.msk.f32.mxu1 %vm327_vm0, %v7990_v54  ;;  %5430 = vmatprep.mubr.msk.f32.mxu0 %vm327_vm0, %v7236_v16 }
 0x427   : > { %5226 = vmatmul.mubr.msk.f32.gmra.mrb[24].mxu1 %vm327_vm0, %v7992_v57  ;;  %5431 = vmatmul.mubr.msk.f32.gmra.mrb[22].mxu0 %vm327_vm0, %v7244_v29 }
 0x428   : > { %5228 = vmatprep.mubr.msk.f32.mxu1 %vm327_vm0, %v7994_v18  ;;  %5433 = vmatprep.mubr.msk.f32.mxu0 %vm327_vm0, %v7252_v21 }
 0x42b   : > { %5229 = vmatmul.mubr.msk.f32.gmra.mrb[26].mxu1 %vm327_vm0, %v7996_v48  ;;  %5434 = vmatmul.mubr.msk.f32.gmra.mrb[24].mxu0 %vm327_vm0, %v7260_v12 }
 0x42c   : > { %5231 = vmatprep.mubr.msk.f32.mxu1 %vm327_vm0, %v7997_v11  ;;  %5436 = vmatprep.mubr.msk.f32.mxu0 %vm327_vm0, %v7971_v17 }
 0x42f   : > { %5232 = vmatmul.mubr.msk.f32.gmra.mrb[28].mxu1 %vm327_vm0, %v7999_v56  ;;  %5437 = vmatmul.mubr.msk.f32.gmra.mrb[26].mxu0 %vm327_vm0, %v8000_v7 }
 0x430   : > { %5234 = vmatprep.mubr.msk.f32.mxu1 %vm327_vm0, %v7574_v9  ;;  %5439 = vmatprep.mubr.msk.f32.mxu0 %vm327_vm0, %v8001_v40 }
 0x433   : > { %5235 = vmatmul.mubr.msk.f32.gmra.mrb[30].mxu1 %vm327_vm0, %v7580_v35  ;;  %5440 = vmatmul.mubr.msk.f32.gmra.mrb[28].mxu0 %vm327_vm0, %v8002_v49 }
 0x434   : > { %5442 = vmatprep.mubr.msk.f32.mxu0 %vm327_vm0, %v3802_v23 }
 0x437   : > { %5443 = vmatmul.mubr.msk.f32.gmra.mrb[30].mxu0 %vm327_vm0, %v3803_v5 }
 0x4aa   : > { %v5139_v6 = vpop.f32.mrb[0].mxu1 }
 0x4ab   : > { %v2028_v0 = vpop.f32.mrb[1].mxu1 }
 0x4ae   : > { %v5142_v2 = vpop.f32.mrb[2].mxu1 }
 0x4af   : > { %v2038_v55 = vpop.f32.mrb[3].mxu1 }
 0x4b2   : > { %v5145_v61 = vpop.f32.mrb[4].mxu1 }
 0x4b3   : > { %v2048_v12 = vpop.f32.mrb[5].mxu1 }
 0x4b6   : > { %v5148_v24 = vpop.f32.mrb[6].mxu1 }
 0x4b7   : > { %v2058_v10 = vpop.f32.mrb[7].mxu1 }
 0x4ba   : > { %v5151_v21 = vpop.f32.mrb[8].mxu1 }
 0x4bb   : > { %v2068_v27 = vpop.f32.mrb[9].mxu1 }
 0x4be   : > { %v5154_v26 = vpop.f32.mrb[10].mxu1 }
 0x4bf   : > { %v2078_v30 = vpop.f32.mrb[11].mxu1 }
 0x4c2   : > { %v5157_v29 = vpop.f32.mrb[12].mxu1 }
 0x4c3   : > { %v2088_v32 = vpop.f32.mrb[13].mxu1 }
 0x4c6   : > { %v5160_v33 = vpop.f32.mrb[14].mxu1 }
 0x4c7   : > { %v7714_v36 = vpop.f32.mrb[15].mxu1 }
 0x4ce   : > { %v5399_v16 = vpop.f32.mrb[0].mxu0 }
 0x4cf   : > { %v5483_v41 = vadd.f32 %v5399_v16, %v5139_v6  ;;  %v3969_v39 = vpop.f32.mrb[1].mxu0 }
 0x4d0   : > { %v5484_v45 = vadd.f32 %v3969_v39, %v2028_v0 }
 0x4d1   : > { %v4168_v47 = vadd.f32 %v5483_v41, %v7716_v38 }
 0x4d2   : > { %v4167_v4 = vadd.f32 %v5484_v45, %v7716_v38  ;;  %v5402_v8 = vpop.f32.mrb[2].mxu0 }
 0x4d3   : > { %4200 = vst.msk [vmem:[%s7722_s30 + $0x8] sm:$0xff] %vm327_vm0, %v4168_v47  ;;  %v5485_v50 = vadd.f32 %v5402_v8, %v5142_v2  ;;  %v3979_v28 = vpop.f32.mrb[3].mxu0 }
 0x4d4   : > { %4199 = vst.msk [vmem:[%s7722_s30] sm:$0xff] %vm327_vm0, %v4167_v4  ;;  %v5486_v51 = vadd.f32 %v3979_v28, %v2038_v55 }
 0x4d5   : > { %v4170_v53 = vadd.f32 %v5485_v50, %v7716_v38 }
 0x4d6   : > { %v4169_v34 = vadd.f32 %v5486_v51, %v7716_v38  ;;  %v5405_v37 = vpop.f32.mrb[4].mxu0 }
 0x4d7   : > { %4202 = vst.msk [vmem:[%s7722_s30 + $0x18] sm:$0xff] %vm327_vm0, %v4170_v53  ;;  %v5487_v13 = vadd.f32 %v5405_v37, %v5145_v61  ;;  %v3989_v19 = vpop.f32.mrb[5].mxu0 }
 0x4d8   : > { %4201 = vst.msk [vmem:[%s7722_s30 + $0x10] sm:$0xff] %vm327_vm0, %v4169_v34  ;;  %v5488_v22 = vadd.f32 %v3989_v19, %v2048_v12 }
 0x4d9   : > { %v4172_v1 = vadd.f32 %v5487_v13, %v7716_v38 }
 0x4da   : > { %v4171_v31 = vadd.f32 %v5488_v22, %v7716_v38  ;;  %v5408_v42 = vpop.f32.mrb[6].mxu0 }
 0x4db   : > { %4204 = vst.msk [vmem:[%s7722_s30 + $0x28] sm:$0xff] %vm327_vm0, %v4172_v1  ;;  %v5489_v46 = vadd.f32 %v5408_v42, %v5148_v24  ;;  %v3999_v43 = vpop.f32.mrb[7].mxu0 }
 0x4dc   : > { %4203 = vst.msk [vmem:[%s7722_s30 + $0x20] sm:$0xff] %vm327_vm0, %v4171_v31  ;;  %v5490_v52 = vadd.f32 %v3999_v43, %v2058_v10 }
 0x4dd   : > { %v4174_v17 = vadd.f32 %v5489_v46, %v7716_v38 }
 0x4de   : > { %v4173_v35 = vadd.f32 %v5490_v52, %v7716_v38  ;;  %v5411_v59 = vpop.f32.mrb[8].mxu0 }
 0x4df   : > { %4206 = vst.msk [vmem:[%s7722_s30 + $0x38] sm:$0xff] %vm327_vm0, %v4174_v17  ;;  %v5491_v3 = vadd.f32 %v5411_v59, %v5151_v21  ;;  %v4009_v14 = vpop.f32.mrb[9].mxu0 }
 0x4e0   : > { %4205 = vst.msk [vmem:[%s7722_s30 + $0x30] sm:$0xff] %vm327_vm0, %v4173_v35  ;;  %v5492_v15 = vadd.f32 %v4009_v14, %v2068_v27 }
 0x4e1   : > { %v4176_v25 = vadd.f32 %v5491_v3, %v7716_v38 }
 0x4e2   : > { %v4175_v60 = vadd.f32 %v5492_v15, %v7716_v38  ;;  %v5414_v44 = vpop.f32.mrb[10].mxu0 }
 0x4e3   : > { %4208 = vst.msk [vmem:[%s7722_s30 + $0x48] sm:$0xff] %vm327_vm0, %v4176_v25  ;;  %v5493_v63 = vadd.f32 %v5414_v44, %v5154_v26  ;;  %v4019_v54 = vpop.f32.mrb[11].mxu0 }
 0x4e4   : > { %4207 = vst.msk [vmem:[%s7722_s30 + $0x40] sm:$0xff] %vm327_vm0, %v4175_v60  ;;  %v5494_v57 = vadd.f32 %v4019_v54, %v2078_v30 }
 0x4e5   : > { %v4178_v18 = vadd.f32 %v5493_v63, %v7716_v38 }
 0x4e6   : > { %v4177_v48 = vadd.f32 %v5494_v57, %v7716_v38  ;;  %v5417_v11 = vpop.f32.mrb[12].mxu0 }
 0x4e7   : > { %4210 = vst.msk [vmem:[%s7722_s30 + $0x58] sm:$0xff] %vm327_vm0, %v4178_v18  ;;  %v5495_v20 = vadd.f32 %v5417_v11, %v5157_v29  ;;  %v4029_v56 = vpop.f32.mrb[13].mxu0 }
 0x4e8   : > { %4209 = vst.msk [vmem:[%s7722_s30 + $0x50] sm:$0xff] %vm327_vm0, %v4177_v48  ;;  %v5496_v9 = vadd.f32 %v4029_v56, %v2088_v32 }
 0x4e9   : > { %v4180_v62 = vadd.f32 %v5495_v20, %v7716_v38 }
 0x4ea   : > { %v4179_v58 = vadd.f32 %v5496_v9, %v7716_v38  ;;  %v5215_v7 = vpop.f32.mrb[16].mxu1  ;;  %v5420_v40 = vpop.f32.mrb[14].mxu0 }
 0x4eb   : > { %4212 = vst.msk [vmem:[%s7722_s30 + $0x68] sm:$0xff] %vm327_vm0, %v4180_v62  ;;  %v5497_v23 = vadd.f32 %v5420_v40, %v5160_v33  ;;  %v2496_v49 = vpop.f32.mrb[17].mxu1  ;;  %v4039_v5 = vpop.f32.mrb[15].mxu0 }
 0x4ec   : > { %4211 = vst.msk [vmem:[%s7722_s30 + $0x60] sm:$0xff] %vm327_vm0, %v4179_v58  ;;  %v5498_v6 = vadd.f32 %v4039_v5, %v7714_v36 }
 0x4ed   : > { %v4182_v0 = vadd.f32 %v5497_v23, %v7716_v38 }
 0x4ee   : > { %v4181_v2 = vadd.f32 %v5498_v6, %v7716_v38  ;;  %v5218_v55 = vpop.f32.mrb[18].mxu1  ;;  %v5423_v61 = vpop.f32.mrb[16].mxu0 }
 0x4ef   : > { %4214 = vst.msk [vmem:[%s7722_s30 + $0x78] sm:$0xff] %vm327_vm0, %v4182_v0  ;;  %v5499_v12 = vadd.f32 %v5423_v61, %v5215_v7  ;;  %v2506_v24 = vpop.f32.mrb[19].mxu1  ;;  %v4049_v10 = vpop.f32.mrb[17].mxu0 }
 0x4f0   : > { %4213 = vst.msk [vmem:[%s7722_s30 + $0x70] sm:$0xff] %vm327_vm0, %v4181_v2  ;;  %v5500_v21 = vadd.f32 %v4049_v10, %v2496_v49 }
 0x4f1   : > { %v4184_v27 = vadd.f32 %v5499_v12, %v7716_v38 }
 0x4f2   : > { %v4183_v26 = vadd.f32 %v5500_v21, %v7716_v38  ;;  %v5221_v30 = vpop.f32.mrb[20].mxu1  ;;  %v5426_v29 = vpop.f32.mrb[18].mxu0 }
 0x4f3   : > { %4216 = vst.msk [vmem:[%s7722_s30 + $0x88] sm:$0xff] %vm327_vm0, %v4184_v27  ;;  %v5501_v32 = vadd.f32 %v5426_v29, %v5218_v55  ;;  %v2516_v33 = vpop.f32.mrb[21].mxu1  ;;  %v4059_v36 = vpop.f32.mrb[19].mxu0 }
 0x4f4   : > { %4215 = vst.msk [vmem:[%s7722_s30 + $0x80] sm:$0xff] %vm327_vm0, %v4183_v26  ;;  %v5502_v16 = vadd.f32 %v4059_v36, %v2506_v24 }
 0x4f5   : > { %v4186_v41 = vadd.f32 %v5501_v32, %v7716_v38 }
 0x4f6   : > { %v4185_v39 = vadd.f32 %v5502_v16, %v7716_v38  ;;  %v5224_v45 = vpop.f32.mrb[22].mxu1  ;;  %v5429_v47 = vpop.f32.mrb[20].mxu0 }
 0x4f7   : > { %4218 = vst.msk [vmem:[%s7722_s30 + $0x98] sm:$0xff] %vm327_vm0, %v4186_v41  ;;  %v5503_v4 = vadd.f32 %v5429_v47, %v5221_v30  ;;  %v2526_v8 = vpop.f32.mrb[23].mxu1  ;;  %v4069_v50 = vpop.f32.mrb[21].mxu0 }
 0x4f8   : > { %4217 = vst.msk [vmem:[%s7722_s30 + $0x90] sm:$0xff] %vm327_vm0, %v4185_v39  ;;  %v5504_v28 = vadd.f32 %v4069_v50, %v2516_v33 }
 0x4f9   : > { %v4188_v51 = vadd.f32 %v5503_v4, %v7716_v38 }
 0x4fa   : > { %v4187_v53 = vadd.f32 %v5504_v28, %v7716_v38  ;;  %v5227_v34 = vpop.f32.mrb[24].mxu1  ;;  %v5432_v37 = vpop.f32.mrb[22].mxu0 }
 0x4fb   : > { %4220 = vst.msk [vmem:[%s7722_s30 + $0xa8] sm:$0xff] %vm327_vm0, %v4188_v51  ;;  %v5505_v13 = vadd.f32 %v5432_v37, %v5224_v45  ;;  %v2536_v19 = vpop.f32.mrb[25].mxu1  ;;  %v4079_v22 = vpop.f32.mrb[23].mxu0 }
 0x4fc   : > { %4219 = vst.msk [vmem:[%s7722_s30 + $0xa0] sm:$0xff] %vm327_vm0, %v4187_v53  ;;  %v5506_v1 = vadd.f32 %v4079_v22, %v2526_v8 }
 0x4fd   : > { %v4190_v31 = vadd.f32 %v5505_v13, %v7716_v38 }
 0x4fe   : > { %v4189_v42 = vadd.f32 %v5506_v1, %v7716_v38  ;;  %v5230_v46 = vpop.f32.mrb[26].mxu1  ;;  %v5435_v43 = vpop.f32.mrb[24].mxu0 }
 0x4ff   : > { %4222 = vst.msk [vmem:[%s7722_s30 + $0xb8] sm:$0xff] %vm327_vm0, %v4190_v31  ;;  %v5507_v52 = vadd.f32 %v5435_v43, %v5227_v34  ;;  %v2546_v17 = vpop.f32.mrb[27].mxu1  ;;  %v4089_v35 = vpop.f32.mrb[25].mxu0 }
 0x500   : > { %4221 = vst.msk [vmem:[%s7722_s30 + $0xb0] sm:$0xff] %vm327_vm0, %v4189_v42  ;;  %v5508_v59 = vadd.f32 %v4089_v35, %v2536_v19 }
 0x501   : > { %v4192_v3 = vadd.f32 %v5507_v52, %v7716_v38 }
 0x502   : > { %v4191_v14 = vadd.f32 %v5508_v59, %v7716_v38  ;;  %v5233_v15 = vpop.f32.mrb[28].mxu1  ;;  %v5438_v25 = vpop.f32.mrb[26].mxu0 }
 0x503   : > { %4224 = vst.msk [vmem:[%s7722_s30 + $0xc8] sm:$0xff] %vm327_vm0, %v4192_v3  ;;  %v5509_v60 = vadd.f32 %v5438_v25, %v5230_v46  ;;  %v2556_v44 = vpop.f32.mrb[29].mxu1  ;;  %v4099_v63 = vpop.f32.mrb[27].mxu0 }
 0x504   : > { %4223 = vst.msk [vmem:[%s7722_s30 + $0xc0] sm:$0xff] %vm327_vm0, %v4191_v14  ;;  %v5510_v54 = vadd.f32 %v4099_v63, %v2546_v17 }
 0x505   : > { %v4194_v57 = vadd.f32 %v5509_v60, %v7716_v38 }
 0x506   : > { %v4193_v18 = vadd.f32 %v5510_v54, %v7716_v38  ;;  %v5236_v48 = vpop.f32.mrb[30].mxu1  ;;  %v5441_v11 = vpop.f32.mrb[28].mxu0 }
 0x507   : > { %4226 = vst.msk [vmem:[%s7722_s30 + $0xd8] sm:$0xff] %vm327_vm0, %v4194_v57  ;;  %v5511_v20 = vadd.f32 %v5441_v11, %v5233_v15  ;;  %v2566_v56 = vpop.f32.mrb[31].mxu1  ;;  %v4109_v9 = vpop.f32.mrb[29].mxu0 }
 0x508   : > { %4225 = vst.msk [vmem:[%s7722_s30 + $0xd0] sm:$0xff] %vm327_vm0, %v4193_v18  ;;  %v5512_v62 = vadd.f32 %v4109_v9, %v2556_v44 }
 0x509   : > { %v4196_v58 = vadd.f32 %v5511_v20, %v7716_v38 }
 0x50a   : > { %v4195_v7 = vadd.f32 %v5512_v62, %v7716_v38  ;;  %v5444_v40 = vpop.f32.mrb[30].mxu0 }
 0x50b   : > { %4228 = vst.msk [vmem:[%s7722_s30 + $0xe8] sm:$0xff] %vm327_vm0, %v4196_v58  ;;  %v5513_v23 = vadd.f32 %v5444_v40, %v5236_v48  ;;  %v4119_v49 = vpop.f32.mrb[31].mxu0 }
 0x50c   : > { %4227 = vst.msk [vmem:[%s7722_s30 + $0xe0] sm:$0xff] %vm327_vm0, %v4195_v7  ;;  %v5514_v5 = vadd.f32 %v4119_v49, %v2566_v56 }
 0x50d   : > { %v4198_v6 = vadd.f32 %v5513_v23, %v7716_v38 }
 0x50e   : > { %v4197_v0 = vadd.f32 %v5514_v5, %v7716_v38 }
 0x50f   : > { %4230 = vst.msk [vmem:[%s7722_s30 + $0xf8] sm:$0xff] %vm327_vm0, %v4198_v6 }
 0x510   : > { %4229 = vst.msk [vmem:[%s7722_s30 + $0xf0] sm:$0xff] %vm327_vm0, %v4197_v0 }
 0x511   : > { %5994 = shalt.err (!%p5991_p13)
}
 0x512   : > { %s5995_s26 = scalar_lea.hbm %s7819_s13, 4096  ;;  %s5999_s28 = scalar_lea.hbm %s7875_s5, 8192 }
 0x513   : > { %p5996_p9 = scmp.ne.s32.totalorder %s7819_s13, %s5995_s26  ;;  %p6000_p6 = scmp.lt.u32.totalorder %s7819_s13, %s7875_s5 }
 0x514   : > { %p6001_p4 = scmp.lt.u32.totalorder %s5999_s28, %s5995_s26  ;;  %p6003_p3 = scmp.lt.u32.totalorder %s5995_s26, %s7819_s13 }
 0x515   : > { %p5997_p0 = pnand %p5996_p9, %p6261_p10 }
 0x516   : > { %p6002_p8 = por %p6001_p4, %p6000_p6 }
 0x517   : > { %p5998_p11 = pneg %p5997_p0 }
 0x518   : > { %p6004_p5 = por %p6003_p3, %p6002_p8 }
 0x51a   : > { %p6005_p7 = pnand %p6004_p5, %p5998_p11 }
 0x51c   : > { %6008 = shalt.err (!%p6005_p7)
}
 0x51d   : > { %s6066_s16 = smov 128   ;;  %s6067_s8 = smov 8  }
 0x51e   : > { %5763 = dma.vmem_to_hbm [thread:$0]  (%p6261_p10), %s7821_s12, 4096, %s7819_s13, %s4232_s22, %s6066_s16, %s6066_s16, %s6067_s8  }
 0x51f PF: > { %s4260_s29 = sand.u32 1, %s6043_s18   ;;  %p8003_p12 = scmp.ne.s32.totalorder %s7927_s25, 0 }
 0x520   : > { %p8004_p1 = scmp.ge.s32.totalorder %s6055_s21, 2  ;;  %s4261_s9 = scalar_lea.sflag [#allocation5], %s4260_s29 }
 0x522   : > { %p5783_p2 = pnand %p8004_p1, %p8003_p12 }
 0x524   : > { %6038 = dma.done.wait (!%p5783_p2), %s4261_s9, 4096  }
 0x525   : > { %6040 = vsyncadd (!%p5783_p2), %s4261_s9, 4294963200  ;;  %p20_p13 = scmp.ge.s32.totalorder %s6251_s14, 4   ;;  %s8005_s18 = smov %s6047_s19 }
 0x526   : > { %s8006_s19 = smov %s6051_s20  ;;  %s8007_s20 = smov %s6267_s11 }
 0x527   : > { %s8008_s21 = smov %s6251_s14  ;;  %22 = sbr.rel (!%p20_p13) target bundleno = 7 (0x7), region = 112 }
 0x52e   :  { %4266 = vsyncpa [#allocation4], 1 }
 0x52f   :  { %4268 = vsyncpa [#allocation4 + $0x1], 1 }
 0x530   :  { %4269 = vsyncpa [#allocation7], 1 }
 0x531   :  { %4270 = vsyncpa [#allocation10], 1 }
 0x532   :  { %4271 = vsyncpa [#allocation5], 1 }
 0x533   :  { %4273 = vsyncpa [#allocation5 + $0x1], 1 }

</bundles_post_ra>
